<compile_context>
chip_gen: v5e
topology: v5e:2x2
jax: 0.10.0
libtpu: 0.0.40
codegen_flags: <defaults>
</compile_context>

<pallas_src>
import functools

import jax
import jax.numpy as jnp
from jax.experimental import pallas as pl
from jax.experimental.pallas import tpu as pltpu

IMG_SIZE = 1 * 28 * 28  # 784
H1, H2, H3, OUT = 512, 256, 128, 1
LEAKY_SLOPE = 0.2


def _leaky_relu(x):
    # 0 < slope < 1 => leaky_relu(x) == max(x, slope * x); 2 VALU ops/element.
    return jnp.maximum(x, LEAKY_SLOPE * x)


def discriminator_kernel(
    x_ref,
    w1_ref, b1_ref,
    w2_ref, b2_ref,
    w3_ref, b3_ref,
    w4_ref, b4_ref,
    o_ref,
):
    """Fused 4-layer MLP + LeakyReLU + sigmoid for one batch tile."""
    # x arrives f32 from HBM; cast to bf16 on the VPU (cheap pack, hides under
    # the layer-1 MXU matmul). No separate XLA cast pass ever touches HBM.
    x = x_ref[...].astype(jnp.bfloat16)                       # (T, 784)

    # Layers 1-3: bf16 MXU matmuls, f32 accumulation, f32 bias + LeakyReLU.
    h = jnp.dot(x, w1_ref[...], preferred_element_type=jnp.float32) + b1_ref[...]
    h = _leaky_relu(h)

    h = jnp.dot(h.astype(jnp.bfloat16), w2_ref[...],
                preferred_element_type=jnp.float32) + b2_ref[...]
    h = _leaky_relu(h)

    h = jnp.dot(h.astype(jnp.bfloat16), w3_ref[...],
                preferred_element_type=jnp.float32) + b3_ref[...]
    h = _leaky_relu(h)                                        # (T, 128) f32

    # Layer 4 (128 -> 1): reduce BEFORE transposing. VPU broadcast-multiply by the
    # (1, 128) weight row, lane reduce to a (T, 1) column, then only T*4 bytes go
    # through a layout change into the lane-dense (1, T) logits row.
    col = jnp.sum(h * w4_ref[...], axis=-1, keepdims=True)    # (T, 1) f32
    logits = col.T + b4_ref[0, 0]                             # (1, T), b4 from SMEM

    # sigmoid: EUP exp + EUP approximate reciprocal.
    sig = pl.reciprocal(1.0 + jnp.exp(-logits), approx=True)
    o_ref[...] = sig.reshape(o_ref.shape).astype(o_ref.dtype)


def _round_up(n, m):
    return ((n + m - 1) // m) * m


@functools.partial(jax.jit, static_argnames=("batch_tile",))
def discriminator_forward(x, params, batch_tile=512):
    """x: (B, IMG_SIZE) float32. Returns sigmoid probabilities of shape (B, 1)."""
    B = x.shape[0]
    # Shrink the tile for small batches so we never pad tiny calls up to 512 rows;
    # tile stays a multiple of 8 (sublane constraint).
    tile = min(batch_tile, _round_up(B, 8))
    n_tiles = pl.cdiv(B, tile)
    b_pad = n_tiles * tile

    if b_pad != B:
        # Pad only when B is ragged; x stays f32 (cast happens inside the kernel).
        x = jnp.pad(x, ((0, b_pad - B), (0, 0)))

    w1, b1 = params["w1"], params["b1"]
    w2, b2 = params["w2"], params["b2"]
    w3, b3 = params["w3"], params["b3"]
    w4, b4 = params["w4"], params["b4"]

    def replicated(arr):
        zeros = (0,) * arr.ndim
        return pl.BlockSpec(arr.shape, lambda i: zeros)

    grid_spec = pltpu.PrefetchScalarGridSpec(
        num_scalar_prefetch=0,
        grid=(n_tiles,),
        in_specs=[
            pl.BlockSpec((tile, IMG_SIZE), lambda i: (i, 0)),   # f32 x tile
            replicated(w1), replicated(b1),
            replicated(w2), replicated(b2),
            replicated(w3), replicated(b3),
            replicated(w4),
            # b4 is a single scalar: keep it in SMEM, no VMEM double-buffer stub.
            pl.BlockSpec(memory_space=pltpu.MemorySpace.SMEM),
        ],
        # Lane-dense output: batch on the lane axis -> unmasked stores.
        out_specs=pl.BlockSpec((1, 1, tile), lambda i: (i, 0, 0)),
    )

    out = pl.pallas_call(
        discriminator_kernel,
        out_shape=jax.ShapeDtypeStruct((n_tiles, 1, tile), jnp.float32),
        grid_spec=grid_spec,
        compiler_params=pltpu.CompilerParams(
            # Batch tiles are independent; shards across cores where supported.
            dimension_semantics=("parallel",),
        ),
    )(x, w1, b1, w2, b2, w3, b3, w4, b4)

    return out.reshape(b_pad, 1)[:B]


def init_params(key):
    """nn.Linear-style init. Weights stored (in, out); w1..w3 bf16, w4 as a (1,128)
    f32 row (kernel reduces over the lane axis), biases f32."""
    keys = jax.random.split(key, 8)

    def linear(kw, kb, fan_in, fan_out, w_dtype):
        bound = 1.0 / (fan_in ** 0.5)
        w = jax.random.uniform(kw, (fan_in, fan_out), jnp.float32, -bound, bound)
        b = jax.random.uniform(kb, (1, fan_out), jnp.float32, -bound, bound)
        return w.astype(w_dtype), b

    w1, b1 = linear(keys[0], keys[1], IMG_SIZE, H1, jnp.bfloat16)
    w2, b2 = linear(keys[2], keys[3], H1, H2, jnp.bfloat16)
    w3, b3 = linear(keys[4], keys[5], H2, H3, jnp.bfloat16)
    w4, b4 = linear(keys[6], keys[7], H3, OUT, jnp.float32)     # (128, 1), (1, 1)
    w4 = w4.reshape(1, H3)                                       # store as (1, 128) row
    return dict(w1=w1, b1=b1, w2=w2, b2=b2, w3=w3, b3=b3, w4=w4, b4=b4)


def reference_forward(x, params):
    """Pure-JAX reference using the same bf16 weights / f32-accumulate math."""
    x = x.astype(jnp.bfloat16)
    h = jnp.dot(x, params["w1"], preferred_element_type=jnp.float32) + params["b1"]
    h = jnp.where(h > 0, h, LEAKY_SLOPE * h)
    h = jnp.dot(h.astype(jnp.bfloat16), params["w2"],
                preferred_element_type=jnp.float32) + params["b2"]
    h = jnp.where(h > 0, h, LEAKY_SLOPE * h)
    h = jnp.dot(h.astype(jnp.bfloat16), params["w3"],
                preferred_element_type=jnp.float32) + params["b3"]
    h = jnp.where(h > 0, h, LEAKY_SLOPE * h)
    logits = jnp.dot(h, params["w4"].reshape(H3, OUT),
                     preferred_element_type=jnp.float32) + params["b4"]
    return jax.nn.sigmoid(logits)


if __name__ == "__main__":
    key = jax.random.PRNGKey(0)
    k_param, k_x, k_x2 = jax.random.split(key, 3)

    params = init_params(k_param)

    # Small batch: tile auto-shrinks to 8 rows, single grid step, no padding pass.
    B = 8
    x = jax.random.normal(k_x, (B, IMG_SIZE), jnp.float32)
    out = jax.block_until_ready(discriminator_forward(x, params))
    ref = reference_forward(x, params)
    assert out.shape == (B, OUT)
    assert jnp.allclose(out, ref, rtol=0.0, atol=5e-3), "mismatch vs JAX reference (B=8)"

    # Multi-tile path: ragged batch -> padding + 3 grid steps on the parallel axis.
    B2 = 300
    x2 = jax.random.normal(k_x2, (B2, IMG_SIZE), jnp.float32)
    out2 = jax.block_until_ready(discriminator_forward(x2, params, batch_tile=128))
    ref2 = reference_forward(x2, params)
    assert out2.shape == (B2, OUT)
    assert jnp.allclose(out2, ref2, rtol=0.0, atol=5e-3), "mismatch vs JAX reference (B=300)"

    print("KERNEL_OK")
</pallas_src>

<mosaic_0001>
module attributes {stable_mosaic.version = 11 : i64} {
  func.func @discriminator_kernel(%arg0: i32, %arg1: memref<8x784xf32, #tpu.memory_space<vmem>>, %arg2: memref<784x512xbf16, #tpu.memory_space<vmem>>, %arg3: memref<1x512xf32, #tpu.memory_space<vmem>>, %arg4: memref<512x256xbf16, #tpu.memory_space<vmem>>, %arg5: memref<1x256xf32, #tpu.memory_space<vmem>>, %arg6: memref<256x128xbf16, #tpu.memory_space<vmem>>, %arg7: memref<1x128xf32, #tpu.memory_space<vmem>>, %arg8: memref<1x128xf32, #tpu.memory_space<vmem>>, %arg9: memref<1x1xf32, #tpu.memory_space<smem>>, %arg10: memref<1x1x8xf32, #tpu.memory_space<vmem>>) attributes {dimension_semantics = [#tpu.dimension_semantics<parallel>], iteration_bounds = array<i64: 1>, scalar_prefetch = 0 : i64, scratch_operands = 0 : i64, tpu.core_type = #tpu.core_type<tc>, window_params = [{transform_indices = @transform_0, window_bounds = array<i64: 8, 784>}, {pipeline_mode = #tpu.pipeline_mode<synchronous>, transform_indices = @transform_1, window_bounds = array<i64: 784, 512>}, {pipeline_mode = #tpu.pipeline_mode<synchronous>, transform_indices = @transform_2, window_bounds = array<i64: 1, 512>}, {pipeline_mode = #tpu.pipeline_mode<synchronous>, transform_indices = @transform_3, window_bounds = array<i64: 512, 256>}, {pipeline_mode = #tpu.pipeline_mode<synchronous>, transform_indices = @transform_4, window_bounds = array<i64: 1, 256>}, {pipeline_mode = #tpu.pipeline_mode<synchronous>, transform_indices = @transform_5, window_bounds = array<i64: 256, 128>}, {pipeline_mode = #tpu.pipeline_mode<synchronous>, transform_indices = @transform_6, window_bounds = array<i64: 1, 128>}, {pipeline_mode = #tpu.pipeline_mode<synchronous>, transform_indices = @transform_7, window_bounds = array<i64: 1, 128>}, {transform_indices = @transform_8, window_bounds = array<i64: 1, 1>}, {transform_indices = @transform_9, window_bounds = array<i64: 1, 1, 8>}]} {
    %c0 = arith.constant 0 : index
    %c0_0 = arith.constant 0 : index
    %0 = vector.load %arg1[%c0, %c0_0] : memref<8x784xf32, #tpu.memory_space<vmem>>, vector<8x784xf32>
    %1 = arith.truncf %0 : vector<8x784xf32> to vector<8x784xbf16>
    %c0_1 = arith.constant 0 : index
    %c0_2 = arith.constant 0 : index
    %2 = vector.load %arg2[%c0_1, %c0_2] : memref<784x512xbf16, #tpu.memory_space<vmem>>, vector<784x512xbf16>
    %cst = arith.constant dense<0.000000e+00> : vector<8x512xf32>
    %3 = tpu.matmul %1, %2, %cst {dimension_numbers = #tpu.dot_dimension_numbers<[1], [0], [0], [1], [0, 0, 1, 1], [], []>} : vector<8x784xbf16>, vector<784x512xbf16>, vector<8x512xf32> -> vector<8x512xf32>
    %c0_3 = arith.constant 0 : index
    %c0_4 = arith.constant 0 : index
    %4 = vector.load %arg3[%c0_3, %c0_4] : memref<1x512xf32, #tpu.memory_space<vmem>>, vector<1x512xf32>
    %5 = vector.broadcast %4 : vector<1x512xf32> to vector<8x512xf32>
    %6 = arith.addf %3, %5 : vector<8x512xf32>
    %cst_5 = arith.constant 2.000000e-01 : f32
    %7 = vector.broadcast %cst_5 : f32 to vector<8x512xf32>
    %8 = arith.mulf %7, %6 : vector<8x512xf32>
    %9 = arith.maximumf %6, %8 : vector<8x512xf32>
    %10 = arith.truncf %9 : vector<8x512xf32> to vector<8x512xbf16>
    %c0_6 = arith.constant 0 : index
    %c0_7 = arith.constant 0 : index
    %11 = vector.load %arg4[%c0_6, %c0_7] : memref<512x256xbf16, #tpu.memory_space<vmem>>, vector<512x256xbf16>
    %cst_8 = arith.constant dense<0.000000e+00> : vector<8x256xf32>
    %12 = tpu.matmul %10, %11, %cst_8 {dimension_numbers = #tpu.dot_dimension_numbers<[1], [0], [0], [1], [0, 0, 1, 1], [], []>} : vector<8x512xbf16>, vector<512x256xbf16>, vector<8x256xf32> -> vector<8x256xf32>
    %c0_9 = arith.constant 0 : index
    %c0_10 = arith.constant 0 : index
    %13 = vector.load %arg5[%c0_9, %c0_10] : memref<1x256xf32, #tpu.memory_space<vmem>>, vector<1x256xf32>
    %14 = vector.broadcast %13 : vector<1x256xf32> to vector<8x256xf32>
    %15 = arith.addf %12, %14 : vector<8x256xf32>
    %cst_11 = arith.constant 2.000000e-01 : f32
    %16 = vector.broadcast %cst_11 : f32 to vector<8x256xf32>
    %17 = arith.mulf %16, %15 : vector<8x256xf32>
    %18 = arith.maximumf %15, %17 : vector<8x256xf32>
    %19 = arith.truncf %18 : vector<8x256xf32> to vector<8x256xbf16>
    %c0_12 = arith.constant 0 : index
    %c0_13 = arith.constant 0 : index
    %20 = vector.load %arg6[%c0_12, %c0_13] : memref<256x128xbf16, #tpu.memory_space<vmem>>, vector<256x128xbf16>
    %cst_14 = arith.constant dense<0.000000e+00> : vector<8x128xf32>
    %21 = tpu.matmul %19, %20, %cst_14 {dimension_numbers = #tpu.dot_dimension_numbers<[1], [0], [0], [1], [0, 0, 1, 1], [], []>} : vector<8x256xbf16>, vector<256x128xbf16>, vector<8x128xf32> -> vector<8x128xf32>
    %c0_15 = arith.constant 0 : index
    %c0_16 = arith.constant 0 : index
    %22 = vector.load %arg7[%c0_15, %c0_16] : memref<1x128xf32, #tpu.memory_space<vmem>>, vector<1x128xf32>
    %23 = vector.broadcast %22 : vector<1x128xf32> to vector<8x128xf32>
    %24 = arith.addf %21, %23 : vector<8x128xf32>
    %cst_17 = arith.constant 2.000000e-01 : f32
    %25 = vector.broadcast %cst_17 : f32 to vector<8x128xf32>
    %26 = arith.mulf %25, %24 : vector<8x128xf32>
    %27 = arith.maximumf %24, %26 : vector<8x128xf32>
    %c0_18 = arith.constant 0 : index
    %c0_19 = arith.constant 0 : index
    %28 = vector.load %arg8[%c0_18, %c0_19] : memref<1x128xf32, #tpu.memory_space<vmem>>, vector<1x128xf32>
    %29 = vector.broadcast %28 : vector<1x128xf32> to vector<8x128xf32>
    %30 = arith.mulf %27, %29 : vector<8x128xf32>
    %cst_20 = arith.constant dense<0.000000e+00> : vector<8xf32>
    %31 = vector.multi_reduction <add>, %30, %cst_20 [1] : vector<8x128xf32> to vector<8xf32>
    %32 = vector.shape_cast %31 : vector<8xf32> to vector<8x1xf32>
    %33 = tpu.transpose %32, [1, 0] : vector<8x1xf32> -> vector<1x8xf32>
    %c0_21 = arith.constant 0 : index
    %c0_22 = arith.constant 0 : index
    %34 = memref.load %arg9[%c0_21, %c0_22] : memref<1x1xf32, #tpu.memory_space<smem>>
    %35 = vector.broadcast %34 : f32 to vector<1x8xf32>
    %36 = arith.addf %33, %35 : vector<1x8xf32>
    %cst_23 = arith.constant 0.000000e+00 : f32
    %37 = vector.broadcast %cst_23 : f32 to vector<1x8xf32>
    %38 = arith.subf %37, %36 : vector<1x8xf32>
    %39 = math.exp %38 : vector<1x8xf32>
    %cst_24 = arith.constant 1.000000e+00 : f32
    %40 = vector.broadcast %cst_24 : f32 to vector<1x8xf32>
    %41 = arith.addf %40, %39 : vector<1x8xf32>
    %42 = tpu.reciprocal %41 {approx = true} : vector<1x8xf32> -> vector<1x8xf32>
    %43 = vector.shape_cast %42 : vector<1x8xf32> to vector<1x1x8xf32>
    %c0_25 = arith.constant 0 : index
    %c0_26 = arith.constant 0 : index
    %c0_27 = arith.constant 0 : index
    %44 = vector.load %arg10[%c0_25, %c0_26, %c0_27] : memref<1x1x8xf32, #tpu.memory_space<vmem>>, vector<1x1x8xf32>
    tpu.vector_store %arg10[%c0_25, %c0_26, %c0_27], %43 {strides = array<i32>} : memref<1x1x8xf32, #tpu.memory_space<vmem>>, vector<1x1x8xf32>,
    return
  }
  func.func @transform_0(%arg0: i32) -> (i32, i32) {
    %c0_i32 = arith.constant 0 : i32
    %c0_i32_0 = arith.constant 0 : i32
    return %arg0, %c0_i32 : i32, i32
  }
  func.func @transform_1(%arg0: i32) -> (i32, i32) {
    %c0_i32 = arith.constant 0 : i32
    %c0_i32_0 = arith.constant 0 : i32
    %c0_i32_1 = arith.constant 0 : i32
    return %c0_i32, %c0_i32_0 : i32, i32
  }
  func.func @transform_2(%arg0: i32) -> (i32, i32) {
    %c0_i32 = arith.constant 0 : i32
    %c0_i32_0 = arith.constant 0 : i32
    %c0_i32_1 = arith.constant 0 : i32
    return %c0_i32, %c0_i32_0 : i32, i32
  }
  func.func @transform_3(%arg0: i32) -> (i32, i32) {
    %c0_i32 = arith.constant 0 : i32
    %c0_i32_0 = arith.constant 0 : i32
    %c0_i32_1 = arith.constant 0 : i32
    return %c0_i32, %c0_i32_0 : i32, i32
  }
  func.func @transform_4(%arg0: i32) -> (i32, i32) {
    %c0_i32 = arith.constant 0 : i32
    %c0_i32_0 = arith.constant 0 : i32
    %c0_i32_1 = arith.constant 0 : i32
    return %c0_i32, %c0_i32_0 : i32, i32
  }
  func.func @transform_5(%arg0: i32) -> (i32, i32) {
    %c0_i32 = arith.constant 0 : i32
    %c0_i32_0 = arith.constant 0 : i32
    %c0_i32_1 = arith.constant 0 : i32
    return %c0_i32, %c0_i32_0 : i32, i32
  }
  func.func @transform_6(%arg0: i32) -> (i32, i32) {
    %c0_i32 = arith.constant 0 : i32
    %c0_i32_0 = arith.constant 0 : i32
    %c0_i32_1 = arith.constant 0 : i32
    return %c0_i32, %c0_i32_0 : i32, i32
  }
  func.func @transform_7(%arg0: i32) -> (i32, i32) {
    %c0_i32 = arith.constant 0 : i32
    %c0_i32_0 = arith.constant 0 : i32
    %c0_i32_1 = arith.constant 0 : i32
    return %c0_i32, %c0_i32_0 : i32, i32
  }
  func.func @transform_8(%arg0: i32) -> (i32, i32) {
    %c0_i32 = arith.constant 0 : i32
    %c0_i32_0 = arith.constant 0 : i32
    %c0_i32_1 = arith.constant 0 : i32
    return %c0_i32, %c0_i32_0 : i32, i32
  }
  func.func @transform_9(%arg0: i32) -> (i32, i32, i32) {
    %c0_i32 = arith.constant 0 : i32
    %c0_i32_0 = arith.constant 0 : i32
    %c0_i32_1 = arith.constant 0 : i32
    return %arg0, %c0_i32, %c0_i32_0 : i32, i32, i32
  }
}

</mosaic_0001>

<bundles_post_ra>
// kernel: discriminator_forward.1
= control target key start
LH: loop header
LB: loop body
LE: loop exit
PB: predicated region body
PF: predicated region fallthrough
CT: control target
= control target key end

     0   :  { %15 = vsyncpa [#allocation4], 0  ;;  %s4132_s0 = inlined_call_operand.hbm [shape: f32[8,784], index: 0, kind: input, shape index: {}]   ;;  %s4133_s1 = inlined_call_operand.hbm [shape: bf16[784,512], index: 1, kind: input, shape index: {}]   ;;  %s4134_s2 = inlined_call_operand.hbm [shape: f32[1,512], index: 2, kind: input, shape index: {}]   ;;  %s4135_s3 = inlined_call_operand.hbm [shape: bf16[512,256], index: 3, kind: input, shape index: {}]   ;;  %s4136_s4 = inlined_call_operand.vmem [shape: f32[1,256], index: 4, kind: input, shape index: {}]   ;;  %s4137_s5 = inlined_call_operand.hbm [shape: bf16[256,128], index: 5, kind: input, shape index: {}]   ;;  %s4138_s6 = inlined_call_operand.vmem [shape: f32[1,128], index: 6, kind: input, shape index: {}]   ;;  %s4139_s7 = inlined_call_operand.vmem [shape: f32[1,128], index: 7, kind: input, shape index: {}]   ;;  %s4140_s8 = inlined_call_operand.<no memory space> [shape: f32[1,1], index: 8, kind: input, shape index: {}]   ;;  %s4141_s9 = inlined_call_operand.hbm [shape: f32[1,1,8], index: 9, kind: output, shape index: {}]  }
   0x1   :  { %16 = vsyncpa [#allocation7], 0 }
   0x2   :  { %17 = vsyncpa [#allocation10], 0  ;;  %s34_s11 = sshll.u32 %s4133_s1, 4  ;;  %s35_s11 = int_to_ptr.hbm [resolvable:$true] %s34_s11 }
   0x3   :  { %18 = vsyncpa [#allocation5], 0  ;;  %s3972_s12 = smov [#allocation6]   ;;  %s58_s16 = sshll.u32 %s4135_s3, 4  ;;  %s59_s16 = int_to_ptr.hbm [resolvable:$true] %s58_s16 }
   0x4   :  { %s36_s13 = sshll.u32 %s3972_s12, 4  ;;  %s3973_s17 = smov 256   ;;  %s37_s13 = int_to_ptr.vmem [resolvable:$true] %s36_s13 }
   0x5   :  { %s3974_s18 = smov 16   ;;  %s3975_s19 = smov [#allocation9]  }
   0x6   :  { %42 = dma.hbm_to_vmem [thread:$0]  %s35_s11, 25088, %s37_s13, [#allocation7], %s3973_s17, %s3973_s17, %s3974_s18  }
   0x7   :  { %s60_s20 = sshll.u32 %s3975_s19, 4  ;;  %s3976_s21 = smov 128   ;;  %s61_s20 = int_to_ptr.vmem [resolvable:$true] %s60_s20 }
   0x8   :  { %s3977_s22 = smov 8   ;;  %s24_s24 = sshll.u32 %s4132_s0, 4  ;;  %s25_s24 = int_to_ptr.hbm [resolvable:$true] %s24_s24 }
   0x9   :  { %66 = dma.hbm_to_vmem [thread:$0]  %s59_s16, 8192, %s61_s20, [#allocation10], %s3976_s21, %s3976_s21, %s3977_s22  }
   0xa   :  { %s3978_s25 = smov [#allocation3]   ;;  %s48_s28 = sshll.u32 %s4134_s2, 4  ;;  %s49_s28 = int_to_ptr.hbm [resolvable:$true] %s48_s28 }
   0xb   :  { %s26_s26 = sshll.u32 %s3978_s25, 4  ;;  %s3979_s29 = smov [#allocation8]   ;;  %s27_s26 = int_to_ptr.vmem [resolvable:$true] %s26_s26 }
   0xc   :  { %29 = dma.hbm_to_vmem [thread:$0]  %s25_s24, 896, %s27_s26, [#allocation4]  }
   0xd   :  { %s50_s30 = sshll.u32 %s3979_s29, 4  ;;  %s73_s12 = sshll.u32 %s4137_s5, 4  ;;  %s51_s30 = int_to_ptr.vmem [resolvable:$true] %s50_s30  ;;  %s74_s12 = int_to_ptr.hbm [resolvable:$true] %s73_s12 }
   0xe   :  { %53 = dma.hbm_to_vmem [thread:$0]  %s49_s28, 64, %s51_s30, [#allocation7]  }
   0xf   :  { %s3980_s0 = smov [#allocation11]   ;;  %s3981_s14 = smov 64  }
  0x10   :  { %s75_s13 = sshll.u32 %s3980_s0, 4  ;;  %s3982_s15 = smov 4   ;;  %s76_s13 = int_to_ptr.vmem [resolvable:$true] %s75_s13 }
  0x11   :  { %81 = dma.hbm_to_vmem [thread:$0]  %s74_s12, 2048, %s76_s13, [#allocation10], %s3981_s14, %s3981_s14, %s3982_s15  }
  0x12   :  { %3964 = dma.done.wait [#allocation4], 896  }
  0x13   :  { %3965 = vsyncadd [#allocation4], 4294966400 }
  0x14   :  { %3966 = dma.done.wait [#allocation7], 25152  }
  0x15   :  { %3967 = vsyncadd [#allocation7], 4294942144 }
  0x16   :  { %3968 = dma.done.wait [#allocation10], 10240  }
  0x17   :  { %3969 = vsyncadd [#allocation10], 4294957056  ;;  %v2531_v0 = vld [vmem:[#allocation6 + $0xe0] sm:$0xf]  ;;  %v3555_v1 = vld [vmem:[#allocation6 + $0xec] sm:$0xf0] }
  0x18   :  { %v2659_v2 = vld [vmem:[#allocation6 + $0x1e0] sm:$0xf]  ;;  %v2532_v3 = vor.u32 %v3555_v1, %v2531_v0  ;;  %v3587_v4 = vld [vmem:[#allocation6 + $0x1ec] sm:$0xf0]  ;;  %vm1309_vm0 = vcmask 130048   ;;  %s2405_s1 = sshll.u32 %s4141_s9, 4  ;;  %s2406_s1 = int_to_ptr.hbm [resolvable:$true] %s2405_s1 }
  0x19   :  { %v2787_v5 = vld [vmem:[#allocation6 + $0x2e0] sm:$0xf]  ;;  %v3619_v6 = vld [vmem:[#allocation6 + $0x2ec] sm:$0xf0]  ;;  %v2660_v7 = vor.u32 %v3587_v4, %v2659_v2  ;;  %vm2396_vm1 = vcmask 57344  }
  0x1a   :  { %v2788_v8 = vor.u32 %v3619_v6, %v2787_v5  ;;  %v2915_v9 = vld [vmem:[#allocation6 + $0x3e0] sm:$0xf]  ;;  %v3651_v10 = vld [vmem:[#allocation6 + $0x3ec] sm:$0xf0]  ;;  %1313 = vmatpush.bf16.msra.mxu0 %v2532_v3 }
  0x1b   :  { %v2515_v11 = vld [vmem:[#allocation6 + $0xc0] sm:$0xf]  ;;  %v2916_v12 = vor.u32 %v3651_v10, %v2915_v9  ;;  %v3551_v13 = vld [vmem:[#allocation6 + $0xcc] sm:$0xf0]  ;;  %1326 = vmatpush.bf16.msra.mxu1 %v2660_v7 }
  0x1c   :  { %v2643_v14 = vld [vmem:[#allocation6 + $0x1c0] sm:$0xf]  ;;  %v3583_v15 = vld [vmem:[#allocation6 + $0x1cc] sm:$0xf0]  ;;  %1339 = vmatpush.bf16.msra.mxu2 %v2788_v8  ;;  %v2516_v16 = vor.u32 %v3551_v13, %v2515_v11 }
  0x1d   :  { %v2644_v17 = vor.u32 %v3583_v15, %v2643_v14  ;;  %v2771_v18 = vld [vmem:[#allocation6 + $0x2c0] sm:$0xf]  ;;  %v3615_v19 = vld [vmem:[#allocation6 + $0x2cc] sm:$0xf0]  ;;  %1352 = vmatpush.bf16.msra.mxu3 %v2916_v12 }
  0x1e   :  { %v2899_v20 = vld [vmem:[#allocation6 + $0x3c0] sm:$0xf]  ;;  %v2772_v21 = vor.u32 %v3615_v19, %v2771_v18  ;;  %v3647_v22 = vld [vmem:[#allocation6 + $0x3cc] sm:$0xf0]  ;;  %1314 = vmatpush.bf16.msra.mxu0 %v2516_v16 }
  0x1f   :  { %v2499_v23 = vld [vmem:[#allocation6 + $0xa0] sm:$0xf]  ;;  %v3547_v24 = vld [vmem:[#allocation6 + $0xac] sm:$0xf0]  ;;  %v2900_v25 = vor.u32 %v3647_v22, %v2899_v20  ;;  %1327 = vmatpush.bf16.msra.mxu1 %v2644_v17 }
  0x20   :  { %v2627_v26 = vld [vmem:[#allocation6 + $0x1a0] sm:$0xf]  ;;  %v3579_v27 = vld [vmem:[#allocation6 + $0x1ac] sm:$0xf0]  ;;  %v2500_v29 = vor.u32 %v3547_v24, %v2499_v23  ;;  %1340 = vmatpush.bf16.msra.mxu2 %v2772_v21 }
  0x21   :  { %v2755_v28 = vld [vmem:[#allocation6 + $0x2a0] sm:$0xf]  ;;  %v3611_v30 = vld [vmem:[#allocation6 + $0x2ac] sm:$0xf0]  ;;  %v2628_v33 = vor.u32 %v3579_v27, %v2627_v26  ;;  %1353 = vmatpush.bf16.msra.mxu3 %v2900_v25 }
  0x22   :  { %v2883_v31 = vld [vmem:[#allocation6 + $0x3a0] sm:$0xf]  ;;  %v3643_v32 = vld [vmem:[#allocation6 + $0x3ac] sm:$0xf0]  ;;  %v2756_v34 = vor.u32 %v3611_v30, %v2755_v28  ;;  %1315 = vmatpush.bf16.msra.mxu0 %v2500_v29 }
  0x23   :  { %v2483_v35 = vld [vmem:[#allocation6 + $0x80] sm:$0xf]  ;;  %v3543_v36 = vld [vmem:[#allocation6 + $0x8c] sm:$0xf0]  ;;  %v2884_v38 = vor.u32 %v3643_v32, %v2883_v31  ;;  %1328 = vmatpush.bf16.msra.mxu1 %v2628_v33  ;;  %v3553_v33 = vld [vmem:[#allocation6 + $0xe4] sm:$0xf] }
  0x24   :  { %v2611_v37 = vld [vmem:[#allocation6 + $0x180] sm:$0xf]  ;;  %v3575_v39 = vld [vmem:[#allocation6 + $0x18c] sm:$0xf0]  ;;  %v2484_v44 = vor.u32 %v3543_v36, %v2483_v35  ;;  %1341 = vmatpush.bf16.msra.mxu2 %v2756_v34  ;;  %v2533_v34 = vld [vmem:[#allocation6 + $0xf0] sm:$0xf0] }
  0x25   :  { %v2739_v40 = vld [vmem:[#allocation6 + $0x280] sm:$0xf]  ;;  %v3607_v41 = vld [vmem:[#allocation6 + $0x28c] sm:$0xf0]  ;;  %v2612_v45 = vor.u32 %v3575_v39, %v2611_v37  ;;  %1354 = vmatpush.bf16.msra.mxu3 %v2884_v38  ;;  %v111_v35 = vld [vmem:[#allocation3 + $0x10] sm:$0xff] }
  0x26   :  { %v2867_v42 = vld [vmem:[#allocation6 + $0x380] sm:$0xf]  ;;  %v3639_v43 = vld [vmem:[#allocation6 + $0x38c] sm:$0xf0]  ;;  %v2740_v46 = vor.u32 %v3607_v41, %v2739_v40  ;;  %1316 = vmatpush.bf16.msra.mxu0 %v2484_v44  ;;  %v109_v40 = vld [vmem:[#allocation3] sm:$0xff] }
  0x27   :  { %v2467_v47 = vld [vmem:[#allocation6 + $0x60] sm:$0xf]  ;;  %v3539_v48 = vld [vmem:[#allocation6 + $0x6c] sm:$0xf0]  ;;  %v2868_v50 = vor.u32 %v3639_v43, %v2867_v42  ;;  %1329 = vmatpush.bf16.msra.mxu1 %v2612_v45  ;;  %v3585_v43 = vld [vmem:[#allocation6 + $0x1e4] sm:$0xf] }
  0x28   :  { %v2595_v49 = vld [vmem:[#allocation6 + $0x160] sm:$0xf]  ;;  %v3571_v51 = vld [vmem:[#allocation6 + $0x16c] sm:$0xf0]  ;;  %v2468_v56 = vor.u32 %v3539_v48, %v2467_v47  ;;  %1342 = vmatpush.bf16.msra.mxu2 %v2740_v46  ;;  %v2661_v44 = vld [vmem:[#allocation6 + $0x1f0] sm:$0xf0]  ;;  %v2536_v47 = vor.u32 %v3553_v33, %v2533_v34 }
  0x29   :  { %v2723_v52 = vld [vmem:[#allocation6 + $0x260] sm:$0xf]  ;;  %v3603_v53 = vld [vmem:[#allocation6 + $0x26c] sm:$0xf0]  ;;  %v2596_v57 = vor.u32 %v3571_v51, %v2595_v49  ;;  %1355 = vmatpush.bf16.msra.mxu3 %v2868_v50  ;;  %v4049_v51 = vpack.c.bf16 %v111_v35, %v111_v35  ;;  %v3569_v35 = vld [vmem:[#allocation6 + $0x164] sm:$0xf] }
  0x2a   :  { %v2851_v54 = vld [vmem:[#allocation6 + $0x360] sm:$0xf]  ;;  %v3635_v55 = vld [vmem:[#allocation6 + $0x36c] sm:$0xf0]  ;;  %v2724_v58 = vor.u32 %v3603_v53, %v2723_v52  ;;  %1317 = vmatpush.bf16.msra.mxu0 %v2468_v56  ;;  %v3549_v53 = vld [vmem:[#allocation6 + $0xc4] sm:$0xf] }
  0x2b   :  { %v2451_v59 = vld [vmem:[#allocation6 + $0x40] sm:$0xf]  ;;  %v3535_v60 = vld [vmem:[#allocation6 + $0x4c] sm:$0xf0]  ;;  %v2852_v62 = vor.u32 %v3635_v55, %v2851_v54  ;;  %1330 = vmatpush.bf16.msra.mxu1 %v2596_v57  ;;  %v2517_v54 = vld [vmem:[#allocation6 + $0xd0] sm:$0xf0]  ;;  %v4051_v55 = vpack.c.bf16 %v109_v40, %v109_v40 }
  0x2c   :  { %v2579_v61 = vld [vmem:[#allocation6 + $0x140] sm:$0xf]  ;;  %v3567_v63 = vld [vmem:[#allocation6 + $0x14c] sm:$0xf0]  ;;  %v2452_v4 = vor.u32 %v3535_v60, %v2451_v59  ;;  %1343 = vmatpush.bf16.msra.mxu2 %v2724_v58  ;;  %v2664_v59 = vor.u32 %v3585_v43, %v2661_v44  ;;  %v3533_v43 = vld [vmem:[#allocation6 + $0x44] sm:$0xf] }
  0x2d   :  { %v2707_v0 = vld [vmem:[#allocation6 + $0x240] sm:$0xf]  ;;  %v3599_v1 = vld [vmem:[#allocation6 + $0x24c] sm:$0xf0]  ;;  %v2580_v5 = vor.u32 %v3567_v63, %v2579_v61  ;;  %1356 = vmatpush.bf16.msra.mxu3 %v2852_v62  ;;  %v3581_v61 = vld [vmem:[#allocation6 + $0x1c4] sm:$0xf] }
  0x2e   :  { %v2835_v2 = vld [vmem:[#allocation6 + $0x340] sm:$0xf]  ;;  %v3631_v3 = vld [vmem:[#allocation6 + $0x34c] sm:$0xf0]  ;;  %v2708_v6 = vor.u32 %v3599_v1, %v2707_v0  ;;  %1318 = vmatpush.bf16.msra.mxu0 %v2452_v4  ;;  %v2645_v62 = vld [vmem:[#allocation6 + $0x1d0] sm:$0xf0]  ;;  %v2520_v0 = vor.u32 %v3549_v53, %v2517_v54 }
  0x2f   :  { %v2435_v7 = vld [vmem:[#allocation6 + $0x20] sm:$0xf]  ;;  %v3531_v8 = vld [vmem:[#allocation6 + $0x2c] sm:$0xf0]  ;;  %v2836_v10 = vor.u32 %v3631_v3, %v2835_v2  ;;  %1331 = vmatpush.bf16.msra.mxu1 %v2580_v5  ;;  %v2453_v44 = vld [vmem:[#allocation6 + $0x50] sm:$0xf0] }
  0x30   :  { %v2563_v9 = vld [vmem:[#allocation6 + $0x120] sm:$0xf]  ;;  %v3563_v11 = vld [vmem:[#allocation6 + $0x12c] sm:$0xf0]  ;;  %v2436_v16 = vor.u32 %v3531_v8, %v2435_v7  ;;  %1344 = vmatpush.bf16.msra.mxu2 %v2708_v6  ;;  %v3545_v6 = vld [vmem:[#allocation6 + $0xa4] sm:$0xf]  ;;  %v2648_v8 = vor.u32 %v3581_v61, %v2645_v62 }
  0x31   :  { %v2691_v12 = vld [vmem:[#allocation6 + $0x220] sm:$0xf]  ;;  %v3595_v13 = vld [vmem:[#allocation6 + $0x22c] sm:$0xf0]  ;;  %v2564_v20 = vor.u32 %v3563_v11, %v2563_v9  ;;  %1357 = vmatpush.bf16.msra.mxu3 %v2836_v10  ;;  %v2501_v7 = vld [vmem:[#allocation6 + $0xb0] sm:$0xf0] }
  0x32   :  { %v2819_v14 = vld [vmem:[#allocation6 + $0x320] sm:$0xf]  ;;  %v3627_v15 = vld [vmem:[#allocation6 + $0x32c] sm:$0xf0]  ;;  %v2692_v21 = vor.u32 %v3595_v13, %v2691_v12  ;;  %1319 = vmatpush.bf16.msra.mxu0 %v2436_v16  ;;  %v3577_v10 = vld [vmem:[#allocation6 + $0x1a4] sm:$0xf]  ;;  %v2504_v13 = vor.u32 %v3545_v6, %v2501_v7 }
  0x33   :  { %v2419_v17 = vld [vmem:[#allocation6] sm:$0xf]  ;;  %v3527_v18 = vld [vmem:[#allocation6 + $0xc] sm:$0xf0]  ;;  %v2820_v25 = vor.u32 %v3627_v15, %v2819_v14  ;;  %1332 = vmatpush.bf16.msra.mxu1 %v2564_v20  ;;  %v2629_v11 = vld [vmem:[#allocation6 + $0x1b0] sm:$0xf0] }
  0x34   :  { %v2547_v19 = vld [vmem:[#allocation6 + $0x100] sm:$0xf]  ;;  %v3559_v22 = vld [vmem:[#allocation6 + $0x10c] sm:$0xf0]  ;;  %v2420_v32 = vor.u32 %v3527_v18, %v2419_v17  ;;  %1345 = vmatpush.bf16.msra.mxu2 %v2692_v21  ;;  %v3541_v18 = vld [vmem:[#allocation6 + $0x84] sm:$0xf]  ;;  %v2632_v20 = vor.u32 %v3577_v10, %v2629_v11 }
  0x35   :  { %v2675_v23 = vld [vmem:[#allocation6 + $0x200] sm:$0xf]  ;;  %v3591_v24 = vld [vmem:[#allocation6 + $0x20c] sm:$0xf0]  ;;  %v2548_v36 = vor.u32 %v3559_v22, %v2547_v19  ;;  %1358 = vmatpush.bf16.msra.mxu3 %v2820_v25  ;;  %v2485_v19 = vld [vmem:[#allocation6 + $0x90] sm:$0xf0] }
  0x36   :  { %v2803_v26 = vld [vmem:[#allocation6 + $0x300] sm:$0xf]  ;;  %v3623_v27 = vld [vmem:[#allocation6 + $0x30c] sm:$0xf0]  ;;  %v2676_v37 = vor.u32 %v3591_v24, %v2675_v23  ;;  %1320 = vmatpush.bf16.msra.mxu0 %v2420_v32  ;;  %v3573_v22 = vld [vmem:[#allocation6 + $0x184] sm:$0xf]  ;;  %v2488_v25 = vor.u32 %v3541_v18, %v2485_v19 }
  0x37   :  { %v3043_v28 = vld [vmem:[#allocation6 + $0x4e0] sm:$0xf]  ;;  %v3683_v29 = vld [vmem:[#allocation6 + $0x4ec] sm:$0xf0]  ;;  %v2804_v41 = vor.u32 %v3623_v27, %v2803_v26  ;;  %1333 = vmatpush.bf16.msra.mxu1 %v2548_v36  ;;  %v2613_v23 = vld [vmem:[#allocation6 + $0x190] sm:$0xf0] }
  0x38   :  { %v3171_v30 = vld [vmem:[#allocation6 + $0x5e0] sm:$0xf]  ;;  %v3715_v31 = vld [vmem:[#allocation6 + $0x5ec] sm:$0xf0]  ;;  %v3044_v42 = vor.u32 %v3683_v29, %v3043_v28  ;;  %1346 = vmatpush.bf16.msra.mxu2 %v2676_v37  ;;  %v115_v32 = vld [vmem:[#allocation3 + $0x30] sm:$0xff]  ;;  %v2616_v33 = vor.u32 %v3573_v22, %v2613_v23 }
  0x39   :  { %v3187_v38 = vld [vmem:[#allocation6 + $0x600] sm:$0xf]  ;;  %v3719_v39 = vld [vmem:[#allocation6 + $0x60c] sm:$0xf0]  ;;  %v3172_v46 = vor.u32 %v3715_v31, %v3171_v30  ;;  %1359 = vmatpush.bf16.msra.mxu3 %v2804_v41  ;;  %1321 = vmatmul.bf16.vlgmr.msra.gmra.mxu0 %v4051_v55  ;;  %v3537_v30 = vld [vmem:[#allocation6 + $0x64] sm:$0xf] }
  0x3a   :  { %v112_v45 = vld [vmem:[#allocation3 + $0x18] sm:$0xff]  ;;  %v3679_v49 = vld [vmem:[#allocation6 + $0x4cc] sm:$0xf0]  ;;  %v3188_v56 = vor.u32 %v3719_v39, %v3187_v38  ;;  %1365 = vmatpush.bf16.msrb.mxu0 %v3044_v42  ;;  %v2469_v31 = vld [vmem:[#allocation6 + $0x70] sm:$0xf0] }
  0x3b   :  { %v3027_v48 = vld [vmem:[#allocation6 + $0x4c0] sm:$0xf]  ;;  %v3711_v52 = vld [vmem:[#allocation6 + $0x5cc] sm:$0xf0]  ;;  %v4053_v57 = vpack.c.bf16 %v112_v45, %v112_v45  ;;  %1378 = vmatpush.bf16.msrb.mxu1 %v3172_v46  ;;  %1347 = vmatmul.bf16.vlgmr.msra.gmra.mxu2 %v4049_v51  ;;  %v2597_v36 = vld [vmem:[#allocation6 + $0x170] sm:$0xf0]  ;;  %v2472_v38 = vor.u32 %v3537_v30, %v2469_v31  ;;  %v4061_v45 = vpack.c.bf16 %v115_v32, %v115_v32 }
  0x3c   :  { %v3155_v50 = vld [vmem:[#allocation6 + $0x5c0] sm:$0xf]  ;;  %v110_v58 = vld [vmem:[#allocation3 + $0x8] sm:$0xff]  ;;  %v3028_v60 = vor.u32 %v3679_v49, %v3027_v48  ;;  %1398 = vmatpush.bf16.msrb.mxu2 %v3188_v56  ;;  %v2600_v46 = vor.u32 %v3569_v35, %v2597_v36  ;;  %v3565_v48 = vld [vmem:[#allocation6 + $0x144] sm:$0xf] }
  0x3d   :  { %1404 = vmatpush.bf16.msrb.mxu3 %v2536_v47  ;;  %v3156_v63 = vor.u32 %v3711_v52, %v3155_v50  ;;  %v3011_v1 = vld [vmem:[#allocation6 + $0x4a0] sm:$0xf]  ;;  %v3675_v2 = vld [vmem:[#allocation6 + $0x4ac] sm:$0xf0]  ;;  %v4057_v4 = vpack.c.bf16 %v110_v58, %v110_v58  ;;  %v2581_v49 = vld [vmem:[#allocation6 + $0x150] sm:$0xf0]  ;;  %v2456_v52 = vor.u32 %v3533_v43, %v2453_v44 }
  0x3e   :  { %v3139_v3 = vld [vmem:[#allocation6 + $0x5a0] sm:$0xf]  ;;  %v3707_v5 = vld [vmem:[#allocation6 + $0x5ac] sm:$0xf0]  ;;  %1360 = vmatmul.bf16.vlgmr.msra.gmra.mxu3 %v4053_v57  ;;  %1366 = vmatpush.bf16.msrb.mxu0 %v3028_v60  ;;  %v3012_v9 = vor.u32 %v3675_v2, %v3011_v1  ;;  %v2437_v60 = vld [vmem:[#allocation6 + $0x30] sm:$0xf0]  ;;  %v2584_v61 = vor.u32 %v3565_v48, %v2581_v49 }
  0x3f   :  { %1379 = vmatpush.bf16.msrb.mxu1 %v3156_v63  ;;  %v3140_v12 = vor.u32 %v3707_v5, %v3139_v3  ;;  %v2995_v14 = vld [vmem:[#allocation6 + $0x480] sm:$0xf]  ;;  %v3671_v15 = vld [vmem:[#allocation6 + $0x48c] sm:$0xf0]  ;;  %v3561_v63 = vld [vmem:[#allocation6 + $0x124] sm:$0xf] }
  0x40   :  { %1417 = vmatpush.bf16.msra.mxu2 %v2664_v59  ;;  %v3123_v16 = vld [vmem:[#allocation6 + $0x580] sm:$0xf]  ;;  %1334 = vmatmul.bf16.vlgmr.msra.gmra.mxu1 %v4057_v4  ;;  %v3703_v17 = vld [vmem:[#allocation6 + $0x58c] sm:$0xf0]  ;;  %v2996_v21 = vor.u32 %v3671_v15, %v2995_v14  ;;  %v3529_v59 = vld [vmem:[#allocation6 + $0x24] sm:$0xf] }
  0x41   :  { %1405 = vmatpush.bf16.msrb.mxu3 %v2520_v0  ;;  %v3124_v24 = vor.u32 %v3703_v17, %v3123_v16  ;;  %v2979_v26 = vld [vmem:[#allocation6 + $0x460] sm:$0xf]  ;;  %v3667_v27 = vld [vmem:[#allocation6 + $0x46c] sm:$0xf0]  ;;  %v2565_v0 = vld [vmem:[#allocation6 + $0x130] sm:$0xf0]  ;;  %v2440_v3 = vor.u32 %v3529_v59, %v2437_v60 }
  0x42   :  { %1367 = vmatpush.bf16.msrb.mxu0 %v3012_v9  ;;  %v3107_v28 = vld [vmem:[#allocation6 + $0x560] sm:$0xf]  ;;  %v3699_v29 = vld [vmem:[#allocation6 + $0x56c] sm:$0xf0]  ;;  %v2980_v34 = vor.u32 %v3667_v27, %v2979_v26  ;;  %v2421_v9 = vld [vmem:[#allocation6 + $0x10] sm:$0xf0]  ;;  %v2568_v14 = vor.u32 %v3561_v63, %v2565_v0 }
  0x43   :  { %1380 = vmatpush.bf16.msrb.mxu1 %v3140_v12  ;;  %v3108_v37 = vor.u32 %v3699_v29, %v3107_v28  ;;  %v2963_v39 = vld [vmem:[#allocation6 + $0x440] sm:$0xf]  ;;  %v3663_v40 = vld [vmem:[#allocation6 + $0x44c] sm:$0xf0]  ;;  %v3617_v10 = vld [vmem:[#allocation6 + $0x2e4] sm:$0xf] }
  0x44   :  { %1418 = vmatpush.bf16.msra.mxu2 %v2648_v8  ;;  %v3091_v41 = vld [vmem:[#allocation6 + $0x540] sm:$0xf]  ;;  %v3695_v42 = vld [vmem:[#allocation6 + $0x54c] sm:$0xf0]  ;;  %v2964_v47 = vor.u32 %v3663_v40, %v2963_v39  ;;  %v3525_v8 = vld [vmem:[#allocation6 + $0x4] sm:$0xf] }
  0x45   :  { %1406 = vmatpush.bf16.msrb.mxu3 %v2504_v13  ;;  %v3092_v50 = vor.u32 %v3695_v42, %v3091_v41  ;;  %v2947_v53 = vld [vmem:[#allocation6 + $0x420] sm:$0xf]  ;;  %v3659_v54 = vld [vmem:[#allocation6 + $0x42c] sm:$0xf0]  ;;  %v2789_v11 = vld [vmem:[#allocation6 + $0x2f0] sm:$0xf0] }
  0x46   :  { %1368 = vmatpush.bf16.msrb.mxu0 %v2996_v21  ;;  %v3075_v56 = vld [vmem:[#allocation6 + $0x520] sm:$0xf]  ;;  %v3691_v58 = vld [vmem:[#allocation6 + $0x52c] sm:$0xf0]  ;;  %v2948_v62 = vor.u32 %v3659_v54, %v2947_v53  ;;  %v3649_v12 = vld [vmem:[#allocation6 + $0x3e4] sm:$0xf] }
  0x47   :  { %1381 = vmatpush.bf16.msrb.mxu1 %v3124_v24  ;;  %v2931_v1 = vld [vmem:[#allocation6 + $0x400] sm:$0xf]  ;;  %v3076_v2 = vor.u32 %v3691_v58, %v3075_v56  ;;  %v3655_v5 = vld [vmem:[#allocation6 + $0x40c] sm:$0xf0]  ;;  %v2917_v13 = vld [vmem:[#allocation6 + $0x3f0] sm:$0xf0]  ;;  %v2792_v24 = vor.u32 %v3617_v10, %v2789_v11 }
  0x48   :  { %1419 = vmatpush.bf16.msra.mxu2 %v2632_v20  ;;  %v3059_v6 = vld [vmem:[#allocation6 + $0x500] sm:$0xf]  ;;  %v3687_v7 = vld [vmem:[#allocation6 + $0x50c] sm:$0xf0]  ;;  %v2932_v15 = vor.u32 %v3655_v5, %v2931_v1  ;;  %v3681_v16 = vld [vmem:[#allocation6 + $0x4e4] sm:$0xf]  ;;  %v2424_v20 = vor.u32 %v3525_v8, %v2421_v9 }
  0x49   :  { %1407 = vmatpush.bf16.msrb.mxu3 %v2488_v25  ;;  %v3045_v17 = vld [vmem:[#allocation6 + $0x4f0] sm:$0xf0]  ;;  %v113_v18 = vld [vmem:[#allocation3 + $0x20] sm:$0xff]  ;;  %v3060_v19 = vor.u32 %v3687_v7, %v3059_v6  ;;  %v3557_v21 = vld [vmem:[#allocation6 + $0x104] sm:$0xf]  ;;  %v2920_v25 = vor.u32 %v3649_v12, %v2917_v13 }
  0x4a   :  { %1369 = vmatpush.bf16.msrb.mxu0 %v2980_v34  ;;  %v2549_v22 = vld [vmem:[#allocation6 + $0x110] sm:$0xf0]  ;;  %v3713_v26 = vld [vmem:[#allocation6 + $0x5e4] sm:$0xf]  ;;  %v3048_v29 = vor.u32 %v3681_v16, %v3045_v17  ;;  %v4065_v30 = vpack.c.bf16 %v113_v18, %v113_v18 }
  0x4b   :  { %1382 = vmatpush.bf16.msrb.mxu1 %v3108_v37  ;;  %3201 = vmatmul.msk.bf16.vlgmr.msrb.gmra.mxu2 %vm1309_vm0, %v4061_v45  ;;  %v114_v23 = vld [vmem:[#allocation3 + $0x28] sm:$0xff]  ;;  %v3613_v28 = vld [vmem:[#allocation6 + $0x2c4] sm:$0xf]  ;;  %v2552_v34 = vor.u32 %v3557_v21, %v2549_v22 }
  0x4c   :  { %1420 = vmatpush.bf16.msra.mxu2 %v2616_v33  ;;  %v3173_v27 = vld [vmem:[#allocation6 + $0x5f0] sm:$0xf0]  ;;  %v3645_v32 = vld [vmem:[#allocation6 + $0x3c4] sm:$0xf]  ;;  %v4067_v35 = vpack.c.bf16 %v114_v23, %v114_v23 }
  0x4d   :  { %1408 = vmatpush.bf16.msrb.mxu3 %v2472_v38  ;;  %v2773_v31 = vld [vmem:[#allocation6 + $0x2d0] sm:$0xf0]  ;;  %v3677_v36 = vld [vmem:[#allocation6 + $0x4c4] sm:$0xf]  ;;  %v3176_v38 = vor.u32 %v3713_v26, %v3173_v27 }
  0x4e   :  { %1370 = vmatpush.bf16.msrb.mxu0 %v2964_v47  ;;  %v2901_v33 = vld [vmem:[#allocation6 + $0x3d0] sm:$0xf0]  ;;  %v2776_v39 = vor.u32 %v3613_v28, %v2773_v31  ;;  %v3709_v41 = vld [vmem:[#allocation6 + $0x5c4] sm:$0xf] }
  0x4f   :  { %1383 = vmatpush.bf16.msrb.mxu1 %v3092_v50  ;;  %v3029_v37 = vld [vmem:[#allocation6 + $0x4d0] sm:$0xf0]  ;;  %v2904_v40 = vor.u32 %v3645_v32, %v2901_v33  ;;  %v3609_v43 = vld [vmem:[#allocation6 + $0x2a4] sm:$0xf] }
  0x50   :  { %1421 = vmatpush.bf16.msra.mxu2 %v2600_v46  ;;  %v3157_v42 = vld [vmem:[#allocation6 + $0x5d0] sm:$0xf0]  ;;  %v3032_v44 = vor.u32 %v3677_v36, %v3029_v37  ;;  %v3641_v47 = vld [vmem:[#allocation6 + $0x3a4] sm:$0xf] }
  0x51   :  { %1409 = vmatpush.bf16.msrb.mxu3 %v2456_v52  ;;  %v2757_v46 = vld [vmem:[#allocation6 + $0x2b0] sm:$0xf0]  ;;  %v3673_v49 = vld [vmem:[#allocation6 + $0x4a4] sm:$0xf]  ;;  %v3160_v52 = vor.u32 %v3709_v41, %v3157_v42 }
  0x52   :  { %1371 = vmatpush.bf16.msrb.mxu0 %v2948_v62  ;;  %v2885_v48 = vld [vmem:[#allocation6 + $0x3b0] sm:$0xf0]  ;;  %v2760_v53 = vor.u32 %v3609_v43, %v2757_v46  ;;  %v3705_v56 = vld [vmem:[#allocation6 + $0x5a4] sm:$0xf] }
  0x53   :  { %1384 = vmatpush.bf16.msrb.mxu1 %v3076_v2  ;;  %v3013_v50 = vld [vmem:[#allocation6 + $0x4b0] sm:$0xf0]  ;;  %v2888_v54 = vor.u32 %v3641_v47, %v2885_v48  ;;  %v3605_v59 = vld [vmem:[#allocation6 + $0x284] sm:$0xf] }
  0x54   :  { %1422 = vmatpush.bf16.msra.mxu2 %v2584_v61  ;;  %v3141_v58 = vld [vmem:[#allocation6 + $0x5b0] sm:$0xf0]  ;;  %v3016_v60 = vor.u32 %v3673_v49, %v3013_v50  ;;  %v3637_v62 = vld [vmem:[#allocation6 + $0x384] sm:$0xf] }
  0x55   :  { %1410 = vmatpush.bf16.msrb.mxu3 %v2440_v3  ;;  %v2741_v61 = vld [vmem:[#allocation6 + $0x290] sm:$0xf0]  ;;  %v3669_v0 = vld [vmem:[#allocation6 + $0x484] sm:$0xf]  ;;  %v3144_v2 = vor.u32 %v3705_v56, %v3141_v58  ;;  %v2539_v56 = vld [vmem:[#allocation6 + $0xe8] sm:$0xf] }
  0x56   :  { %1372 = vmatpush.bf16.msrb.mxu0 %v2932_v15  ;;  %v2869_v63 = vld [vmem:[#allocation6 + $0x390] sm:$0xf0]  ;;  %v2744_v3 = vor.u32 %v3605_v59, %v2741_v61  ;;  %v3701_v6 = vld [vmem:[#allocation6 + $0x584] sm:$0xf]  ;;  %v3556_v58 = vld [vmem:[#allocation6 + $0xf4] sm:$0xf0] }
  0x57   :  { %1385 = vmatpush.bf16.msrb.mxu1 %v3060_v19  ;;  %v2997_v1 = vld [vmem:[#allocation6 + $0x490] sm:$0xf0]  ;;  %v2872_v5 = vor.u32 %v3637_v62, %v2869_v63  ;;  %v3601_v8 = vld [vmem:[#allocation6 + $0x264] sm:$0xf]  ;;  %v2667_v59 = vld [vmem:[#allocation6 + $0x1e8] sm:$0xf] }
  0x58   :  { %1423 = vmatpush.bf16.msra.mxu2 %v2568_v14  ;;  %v3125_v7 = vld [vmem:[#allocation6 + $0x590] sm:$0xf0]  ;;  %v3000_v9 = vor.u32 %v3669_v0, %v2997_v1  ;;  %v3633_v11 = vld [vmem:[#allocation6 + $0x364] sm:$0xf]  ;;  %v3588_v61 = vld [vmem:[#allocation6 + $0x1f4] sm:$0xf0] }
  0x59   :  { %1411 = vmatpush.bf16.msrb.mxu3 %v2424_v20  ;;  %1373 = vmatmul.bf16.vlgmr.msrb.gmra.mxu0 %v4065_v30  ;;  %v2725_v10 = vld [vmem:[#allocation6 + $0x270] sm:$0xf0]  ;;  %v3665_v13 = vld [vmem:[#allocation6 + $0x464] sm:$0xf]  ;;  %v3128_v15 = vor.u32 %v3701_v6, %v3125_v7  ;;  %v2540_v6 = vor.u32 %v3556_v58, %v2539_v56  ;;  %v2923_v7 = vld [vmem:[#allocation6 + $0x3e8] sm:$0xf] }
  0x5a   :  { %1430 = vmatpush.bf16.msra.mxu0 %v2792_v24  ;;  %1386 = vmatmul.bf16.vlgmr.msrb.gmra.mxu1 %v4067_v35  ;;  %v2853_v12 = vld [vmem:[#allocation6 + $0x370] sm:$0xf0]  ;;  %v2728_v16 = vor.u32 %v3601_v8, %v2725_v10  ;;  %v3697_v18 = vld [vmem:[#allocation6 + $0x564] sm:$0xf]  ;;  %v3652_v8 = vld [vmem:[#allocation6 + $0x3f4] sm:$0xf0]  ;;  %v2668_v10 = vor.u32 %v3588_v61, %v2667_v59 }
  0x5b   :  { %1443 = vmatpush.bf16.msra.mxu1 %v2920_v25  ;;  %v2981_v14 = vld [vmem:[#allocation6 + $0x470] sm:$0xf0]  ;;  %v2856_v17 = vor.u32 %v3633_v11, %v2853_v12  ;;  %v3597_v20 = vld [vmem:[#allocation6 + $0x244] sm:$0xf]  ;;  %v3552_v11 = vld [vmem:[#allocation6 + $0xd4] sm:$0xf0] }
  0x5c   :  { %1424 = vmatpush.bf16.msra.mxu2 %v2552_v34  ;;  %1412 = vmatmul.bf16.vlgmr.msrb.gmra.mxu3 %v4051_v55  ;;  %v3109_v19 = vld [vmem:[#allocation6 + $0x570] sm:$0xf0]  ;;  %v2984_v21 = vor.u32 %v3665_v13, %v2981_v14  ;;  %v3629_v23 = vld [vmem:[#allocation6 + $0x344] sm:$0xf]  ;;  %v2795_v13 = vld [vmem:[#allocation6 + $0x2e8] sm:$0xf] }
  0x5d   :  { %1456 = vmatpush.bf16.msra.mxu3 %v3048_v29  ;;  %v2709_v22 = vld [vmem:[#allocation6 + $0x250] sm:$0xf0]  ;;  %v3661_v25 = vld [vmem:[#allocation6 + $0x444] sm:$0xf]  ;;  %v3112_v27 = vor.u32 %v3697_v18, %v3109_v19  ;;  %v3620_v14 = vld [vmem:[#allocation6 + $0x2f4] sm:$0xf0]  ;;  %v2924_v18 = vor.u32 %v3652_v8, %v2923_v7 }
  0x5e   :  { %1431 = vmatpush.bf16.msra.mxu0 %v2776_v39  ;;  %v2837_v24 = vld [vmem:[#allocation6 + $0x350] sm:$0xf0]  ;;  %v2712_v28 = vor.u32 %v3597_v20, %v2709_v22  ;;  %v3693_v31 = vld [vmem:[#allocation6 + $0x544] sm:$0xf]  ;;  %v2907_v20 = vld [vmem:[#allocation6 + $0x3c8] sm:$0xf] }
  0x5f   :  { %1444 = vmatpush.bf16.msra.mxu1 %v2904_v40  ;;  %1425 = vmatmul.bf16.vlgmr.msra.gmra.mxu2 %v4057_v4  ;;  %v2965_v26 = vld [vmem:[#allocation6 + $0x450] sm:$0xf0]  ;;  %v2840_v29 = vor.u32 %v3629_v23, %v2837_v24  ;;  %v3593_v33 = vld [vmem:[#allocation6 + $0x224] sm:$0xf]  ;;  %v2507_v22 = vld [vmem:[#allocation6 + $0xa8] sm:$0xf]  ;;  %v2796_v23 = vor.u32 %v3620_v14, %v2795_v13 }
  0x60   :  { %1469 = vmatpush.bf16.msrb.mxu2 %v3176_v38  ;;  %v3093_v32 = vld [vmem:[#allocation6 + $0x550] sm:$0xf0]  ;;  %v2968_v34 = vor.u32 %v3661_v25, %v2965_v26  ;;  %v3625_v37 = vld [vmem:[#allocation6 + $0x324] sm:$0xf]  ;;  %v3548_v25 = vld [vmem:[#allocation6 + $0xb4] sm:$0xf0] }
  0x61   :  { %1457 = vmatpush.bf16.msra.mxu3 %v3032_v44  ;;  %v2693_v36 = vld [vmem:[#allocation6 + $0x230] sm:$0xf0]  ;;  %v3657_v39 = vld [vmem:[#allocation6 + $0x424] sm:$0xf]  ;;  %v3096_v42 = vor.u32 %v3693_v31, %v3093_v32  ;;  %v2779_v26 = vld [vmem:[#allocation6 + $0x2c8] sm:$0xf]  ;;  %v2508_v32 = vor.u32 %v3548_v25, %v2507_v22 }
  0x62   :  { %1432 = vmatpush.bf16.msra.mxu0 %v2760_v53  ;;  %v2821_v38 = vld [vmem:[#allocation6 + $0x330] sm:$0xf0]  ;;  %v3689_v41 = vld [vmem:[#allocation6 + $0x524] sm:$0xf]  ;;  %v2696_v47 = vor.u32 %v3593_v33, %v2693_v36  ;;  %v2891_v33 = vld [vmem:[#allocation6 + $0x3a8] sm:$0xf] }
  0x63   :  { %1445 = vmatpush.bf16.msra.mxu1 %v2888_v54  ;;  %v2949_v40 = vld [vmem:[#allocation6 + $0x430] sm:$0xf0]  ;;  %v3589_v44 = vld [vmem:[#allocation6 + $0x204] sm:$0xf]  ;;  %v2824_v48 = vor.u32 %v3625_v37, %v2821_v38  ;;  %v2491_v36 = vld [vmem:[#allocation6 + $0x88] sm:$0xf] }
  0x64   :  { %1470 = vmatpush.bf16.msrb.mxu2 %v3160_v52  ;;  %v3077_v43 = vld [vmem:[#allocation6 + $0x530] sm:$0xf0]  ;;  %v3621_v49 = vld [vmem:[#allocation6 + $0x304] sm:$0xf]  ;;  %v2952_v53 = vor.u32 %v3657_v39, %v2949_v40  ;;  %v3544_v39 = vld [vmem:[#allocation6 + $0x94] sm:$0xf0] }
  0x65   :  { %1458 = vmatpush.bf16.msra.mxu3 %v3016_v60  ;;  %v2677_v46 = vld [vmem:[#allocation6 + $0x210] sm:$0xf0]  ;;  %v3653_v52 = vld [vmem:[#allocation6 + $0x404] sm:$0xf]  ;;  %v3080_v60 = vor.u32 %v3689_v41, %v3077_v43  ;;  %v2763_v40 = vld [vmem:[#allocation6 + $0x2a8] sm:$0xf] }
  0x66   :  { %1433 = vmatpush.bf16.msra.mxu0 %v2744_v3  ;;  %v2805_v50 = vld [vmem:[#allocation6 + $0x310] sm:$0xf0]  ;;  %v3717_v62 = vld [vmem:[#allocation6 + $0x604] sm:$0xf]  ;;  %v2680_v0 = vor.u32 %v3589_v44, %v2677_v46  ;;  %v3612_v41 = vld [vmem:[#allocation6 + $0x2b4] sm:$0xf0]  ;;  %v2492_v46 = vor.u32 %v3544_v39, %v2491_v36 }
  0x67   :  { %1446 = vmatpush.bf16.msra.mxu1 %v2872_v5  ;;  %v2933_v54 = vld [vmem:[#allocation6 + $0x410] sm:$0xf0]  ;;  %v2808_v1 = vor.u32 %v3621_v49, %v2805_v50  ;;  %v3576_v43 = vld [vmem:[#allocation6 + $0x194] sm:$0xf0]  ;;  %v2475_v49 = vld [vmem:[#allocation6 + $0x68] sm:$0xf]  ;;  %v2764_v50 = vor.u32 %v3612_v41, %v2763_v40 }
  0x68   :  { %1471 = vmatpush.bf16.msrb.mxu2 %v3144_v2  ;;  %v3189_v63 = vld [vmem:[#allocation6 + $0x610] sm:$0xf0]  ;;  %v3685_v2 = vld [vmem:[#allocation6 + $0x504] sm:$0xf]  ;;  %v2936_v5 = vor.u32 %v3653_v52, %v2933_v54  ;;  %v2747_v54 = vld [vmem:[#allocation6 + $0x288] sm:$0xf] }
  0x69   :  { %1459 = vmatpush.bf16.msra.mxu3 %v3000_v9  ;;  %v3061_v3 = vld [vmem:[#allocation6 + $0x510] sm:$0xf0]  ;;  %v2523_v9 = vld [vmem:[#allocation6 + $0xc8] sm:$0xf]  ;;  %v3192_v12 = vor.u32 %v3717_v62, %v3189_v63  ;;  %v3608_v56 = vld [vmem:[#allocation6 + $0x294] sm:$0xf0] }
  0x6a   :  { %1434 = vmatpush.bf16.msra.mxu0 %v2728_v16  ;;  %v2651_v16 = vld [vmem:[#allocation6 + $0x1c8] sm:$0xf]  ;;  %v2524_v19 = vor.u32 %v3552_v11, %v2523_v9  ;;  %v3572_v59 = vld [vmem:[#allocation6 + $0x174] sm:$0xf0] }
  0x6b   :  { %1447 = vmatpush.bf16.msra.mxu1 %v2856_v17  ;;  %v3584_v17 = vld [vmem:[#allocation6 + $0x1d4] sm:$0xf0]  ;;  %v2603_v58 = vld [vmem:[#allocation6 + $0x168] sm:$0xf] }
  0x6c   :  { %1472 = vmatpush.bf16.msrb.mxu2 %v3128_v15  ;;  %v3064_v15 = vor.u32 %v3685_v2, %v3061_v3  ;;  %v2652_v24 = vor.u32 %v3584_v17, %v2651_v16  ;;  %v2859_v62 = vld [vmem:[#allocation6 + $0x368] sm:$0xf]  ;;  %v3636_v63 = vld [vmem:[#allocation6 + $0x374] sm:$0xf0]  ;;  %v2604_v2 = vor.u32 %v3572_v59, %v2603_v58 }
  0x6d   :  { %1460 = vmatpush.bf16.msra.mxu3 %v2984_v21  ;;  %v3648_v21 = vld [vmem:[#allocation6 + $0x3d4] sm:$0xf0]  ;;  %v2587_v7 = vld [vmem:[#allocation6 + $0x148] sm:$0xf]  ;;  %v2860_v9 = vor.u32 %v3636_v63, %v2859_v62 }
  0x6e   :  { %1435 = vmatpush.bf16.msra.mxu0 %v2712_v28  ;;  %v2635_v28 = vld [vmem:[#allocation6 + $0x1a8] sm:$0xf]  ;;  %v2908_v31 = vor.u32 %v3648_v21, %v2907_v20  ;;  %v3536_v3 = vld [vmem:[#allocation6 + $0x54] sm:$0xf0] }
  0x6f   :  { %1448 = vmatpush.bf16.msra.mxu1 %v2840_v29  ;;  %v3580_v29 = vld [vmem:[#allocation6 + $0x1b4] sm:$0xf0]  ;;  %v2843_v11 = vld [vmem:[#allocation6 + $0x348] sm:$0xf] }
  0x70   :  { %1473 = vmatpush.bf16.msrb.mxu2 %v3112_v27  ;;  %v3616_v27 = vld [vmem:[#allocation6 + $0x2d4] sm:$0xf0]  ;;  %v2636_v38 = vor.u32 %v3580_v29, %v2635_v28  ;;  %v2443_v13 = vld [vmem:[#allocation6 + $0x28] sm:$0xf] }
  0x71   :  { %1461 = vmatpush.bf16.msra.mxu3 %v2968_v34  ;;  %v3644_v34 = vld [vmem:[#allocation6 + $0x3b4] sm:$0xf0]  ;;  %v2780_v37 = vor.u32 %v3616_v27, %v2779_v26  ;;  %v2715_v17 = vld [vmem:[#allocation6 + $0x248] sm:$0xf] }
  0x72   :  { %1436 = vmatpush.bf16.msra.mxu0 %v2696_v47  ;;  %v2892_v44 = vor.u32 %v3644_v34, %v2891_v33  ;;  %v2875_v47 = vld [vmem:[#allocation6 + $0x388] sm:$0xf]  ;;  %v3568_v8 = vld [vmem:[#allocation6 + $0x154] sm:$0xf0] }
  0x73   :  { %1449 = vmatpush.bf16.msra.mxu1 %v2824_v48  ;;  %v3640_v48 = vld [vmem:[#allocation6 + $0x394] sm:$0xf0]  ;;  %v2827_v22 = vld [vmem:[#allocation6 + $0x328] sm:$0xf] }
  0x74   :  { %1474 = vmatpush.bf16.msrb.mxu2 %v3096_v42  ;;  %v2619_v42 = vld [vmem:[#allocation6 + $0x188] sm:$0xf]  ;;  %v3532_v16 = vld [vmem:[#allocation6 + $0x34] sm:$0xf0] }
  0x75   :  { %1462 = vmatpush.bf16.msra.mxu3 %v2952_v53  ;;  %v2620_v52 = vor.u32 %v3576_v43, %v2619_v42  ;;  %v3540_v53 = vld [vmem:[#allocation6 + $0x74] sm:$0xf0]  ;;  %v2427_v25 = vld [vmem:[#allocation6 + $0x8] sm:$0xf] }
  0x76   :  { %1437 = vmatpush.bf16.msra.mxu0 %v2680_v0  ;;  %v2476_v61 = vor.u32 %v3540_v53, %v2475_v49  ;;  %v2459_v0 = vld [vmem:[#allocation6 + $0x48] sm:$0xf]  ;;  %v3564_v20 = vld [vmem:[#allocation6 + $0x134] sm:$0xf0] }
  0x77   :  { %1450 = vmatpush.bf16.msra.mxu1 %v2808_v1  ;;  %v2748_v1 = vor.u32 %v3608_v56, %v2747_v54  ;;  %v3528_v26 = vld [vmem:[#allocation6 + $0x14] sm:$0xf0]  ;;  %v2555_v29 = vld [vmem:[#allocation6 + $0x108] sm:$0xf] }
  0x78   :  { %1475 = vmatpush.bf16.msrb.mxu2 %v3080_v60  ;;  %v2876_v60 = vor.u32 %v3640_v48, %v2875_v47  ;;  %v3560_v33 = vld [vmem:[#allocation6 + $0x114] sm:$0xf0]  ;;  %v3051_v34 = vld [vmem:[#allocation6 + $0x4e8] sm:$0xf]  ;;  %v2428_v41 = vor.u32 %v3528_v26, %v2427_v25  ;;  %v3542_v25 = vld [vmem:[#allocation6 + $0x8c] sm:$0xf] }
  0x79   :  { %1463 = vmatpush.bf16.msra.mxu3 %v2936_v5  ;;  %1438 = vmatmul.bf16.vlgmr.msra.gmra.mxu0 %v4049_v51  ;;  %v2731_v5 = vld [vmem:[#allocation6 + $0x268] sm:$0xf]  ;;  %v3684_v36 = vld [vmem:[#allocation6 + $0x4f4] sm:$0xf0]  ;;  %v2556_v47 = vor.u32 %v3560_v33, %v2555_v29  ;;  %v3578_v29 = vld [vmem:[#allocation6 + $0x1ac] sm:$0xf] }
  0x7a   :  { %1489 = vmatpush.bf16.msrb.mxu0 %v3192_v12  ;;  %1451 = vmatmul.bf16.vlgmr.msra.gmra.mxu1 %v4053_v57  ;;  %v3632_v12 = vld [vmem:[#allocation6 + $0x354] sm:$0xf0]  ;;  %v2811_v40 = vld [vmem:[#allocation6 + $0x308] sm:$0xf]  ;;  %v3052_v48 = vor.u32 %v3684_v36, %v3051_v34 }
  0x7b   :  { %1495 = vmatpush.bf16.msrb.mxu1 %v2540_v6  ;;  %v3604_v6 = vld [vmem:[#allocation6 + $0x274] sm:$0xf0]  ;;  %v2844_v21 = vor.u32 %v3632_v12, %v2843_v11  ;;  %v3035_v49 = vld [vmem:[#allocation6 + $0x4c8] sm:$0xf] }
  0x7c   :  { %1476 = vmatpush.bf16.msrb.mxu2 %v3064_v15  ;;  %1464 = vmatmul.bf16.vlgmr.msra.gmra.mxu3 %v4065_v30  ;;  %v2732_v14 = vor.u32 %v3604_v6, %v2731_v5  ;;  %v2588_v15 = vor.u32 %v3568_v8, %v2587_v7  ;;  %v3716_v39 = vld [vmem:[#allocation6 + $0x5f4] sm:$0xf0]  ;;  %v3195_v56 = vld [vmem:[#allocation6 + $0x608] sm:$0xf]  ;;  %v3586_v5 = vld [vmem:[#allocation6 + $0x1ec] sm:$0xf] }
  0x7d   :  { %1508 = vmatpush.bf16.msrb.mxu3 %v2668_v10  ;;  %v2460_v10 = vor.u32 %v3536_v3, %v2459_v0  ;;  %v3624_v42 = vld [vmem:[#allocation6 + $0x314] sm:$0xf0]  ;;  %v3550_v0 = vld [vmem:[#allocation6 + $0xcc] sm:$0xf]  ;;  %v2669_v6 = vld [vmem:[#allocation6 + $0x1f8] sm:$0xf0] }
  0x7e   :  { %1521 = vmatpush.bf16.msra.mxu0 %v2796_v23  ;;  %v2444_v23 = vor.u32 %v3532_v16, %v2443_v13  ;;  %v3680_v54 = vld [vmem:[#allocation6 + $0x4d4] sm:$0xf0]  ;;  %v2812_v59 = vor.u32 %v3624_v42, %v2811_v40  ;;  %v3019_v8 = vld [vmem:[#allocation6 + $0x4a8] sm:$0xf]  ;;  %v3546_v13 = vld [vmem:[#allocation6 + $0xac] sm:$0xf] }
  0x7f   :  { %1496 = vmatpush.bf16.msrb.mxu1 %v2524_v19  ;;  %1477 = vmatmul.bf16.vlgmr.msrb.gmra.mxu2 %v4067_v35  ;;  %v2571_v19 = vld [vmem:[#allocation6 + $0x128] sm:$0xf]  ;;  %v3720_v58 = vld [vmem:[#allocation6 + $0x614] sm:$0xf0]  ;;  %v2509_v16 = vld [vmem:[#allocation6 + $0xb8] sm:$0xf0] }
  0x80   :  { %1534 = vmatpush.bf16.msra.mxu2 %v2924_v18  ;;  %v3600_v18 = vld [vmem:[#allocation6 + $0x254] sm:$0xf0]  ;;  %v2572_v28 = vor.u32 %v3564_v20, %v2571_v19  ;;  %v3196_v3 = vor.u32 %v3720_v58, %v3195_v56  ;;  %v3003_v20 = vld [vmem:[#allocation6 + $0x488] sm:$0xf]  ;;  %v2477_v42 = vld [vmem:[#allocation6 + $0x78] sm:$0xf0] }
  0x81   :  { %1509 = vmatpush.bf16.msrb.mxu3 %v2652_v24  ;;  %v3628_v24 = vld [vmem:[#allocation6 + $0x334] sm:$0xf0]  ;;  %v2716_v27 = vor.u32 %v3600_v18, %v2715_v17  ;;  %v3582_v17 = vld [vmem:[#allocation6 + $0x1cc] sm:$0xf]  ;;  %v2653_v18 = vld [vmem:[#allocation6 + $0x1d8] sm:$0xf0] }
  0x82   :  { %1522 = vmatpush.bf16.msra.mxu0 %v2780_v37  ;;  %v2828_v37 = vor.u32 %v3628_v24, %v2827_v22  ;;  %v3708_v11 = vld [vmem:[#allocation6 + $0x5b4] sm:$0xf0]  ;;  %v3131_v22 = vld [vmem:[#allocation6 + $0x588] sm:$0xf]  ;;  %v2512_v24 = vor.u32 %v3546_v13, %v2509_v16  ;;  %v2656_v26 = vor.u32 %v3582_v17, %v2653_v18  ;;  %v2461_v58 = vld [vmem:[#allocation6 + $0x58] sm:$0xf0] }
  0x83   :  { %1497 = vmatpush.bf16.msrb.mxu1 %v2508_v32  ;;  %v3596_v32 = vld [vmem:[#allocation6 + $0x234] sm:$0xf0]  ;;  %v2987_v33 = vld [vmem:[#allocation6 + $0x468] sm:$0xf]  ;;  %v2797_v16 = vld [vmem:[#allocation6 + $0x2f8] sm:$0xf0] }
  0x84   :  { %1535 = vmatpush.bf16.msra.mxu2 %v2908_v31  ;;  %v2699_v31 = vld [vmem:[#allocation6 + $0x228] sm:$0xf]  ;;  %v3668_v34 = vld [vmem:[#allocation6 + $0x474] sm:$0xf0]  ;;  %v3650_v18 = vld [vmem:[#allocation6 + $0x3ec] sm:$0xf] }
  0x85   :  { %1510 = vmatpush.bf16.msrb.mxu3 %v2636_v38  ;;  %v3179_v38 = vld [vmem:[#allocation6 + $0x5e8] sm:$0xf]  ;;  %v2700_v43 = vor.u32 %v3596_v32, %v2699_v31  ;;  %v2637_v31 = vld [vmem:[#allocation6 + $0x1b8] sm:$0xf0] }
  0x86   :  { %1523 = vmatpush.bf16.msra.mxu0 %v2764_v50  ;;  %v2683_v50 = vld [vmem:[#allocation6 + $0x208] sm:$0xf]  ;;  %v3180_v53 = vor.u32 %v3716_v39, %v3179_v38  ;;  %v3538_v39 = vld [vmem:[#allocation6 + $0x6c] sm:$0xf]  ;;  %v2640_v40 = vor.u32 %v3578_v29, %v2637_v31  ;;  %v2781_v31 = vld [vmem:[#allocation6 + $0x2d8] sm:$0xf0] }
  0x87   :  { %1498 = vmatpush.bf16.msrb.mxu1 %v2492_v46  ;;  %v2541_v46 = vld [vmem:[#allocation6 + $0xf8] sm:$0xf0]  ;;  %v3115_v36 = vld [vmem:[#allocation6 + $0x568] sm:$0xf] }
  0x88   :  { %1536 = vmatpush.bf16.msra.mxu2 %v2892_v44  ;;  %v3554_v44 = vld [vmem:[#allocation6 + $0xec] sm:$0xf]  ;;  %v3067_v13 = vld [vmem:[#allocation6 + $0x508] sm:$0xf] }
  0x89   :  { %1511 = vmatpush.bf16.msrb.mxu3 %v2620_v52  ;;  %3202 = vmatmul.msk.bf16.vlgmr.msrb.gmra.mxu0 %vm1309_vm0, %v4061_v45  ;;  %v3592_v52 = vld [vmem:[#allocation6 + $0x214] sm:$0xf0]  ;;  %v2544_v62 = vor.u32 %v3554_v44, %v2541_v46  ;;  %v2621_v44 = vld [vmem:[#allocation6 + $0x198] sm:$0xf0] }
  0x8a   :  { %1524 = vmatpush.bf16.msra.mxu0 %v2748_v1  ;;  %v2684_v63 = vor.u32 %v3592_v52, %v2683_v50  ;;  %v3036_v1 = vor.u32 %v3680_v54, %v3035_v49  ;;  %v3099_v49 = vld [vmem:[#allocation6 + $0x548] sm:$0xf]  ;;  %v3696_v50 = vld [vmem:[#allocation6 + $0x554] sm:$0xf0]  ;;  %v2480_v52 = vor.u32 %v3538_v39, %v2477_v42  ;;  %v3678_v39 = vld [vmem:[#allocation6 + $0x4cc] sm:$0xf] }
  0x8b   :  { %1499 = vmatpush.bf16.msrb.mxu1 %v2476_v61  ;;  %v3712_v61 = vld [vmem:[#allocation6 + $0x5d4] sm:$0xf0]  ;;  %v3037_v42 = vld [vmem:[#allocation6 + $0x4d8] sm:$0xf0] }
  0x8c   :  { %1537 = vmatpush.bf16.msra.mxu2 %v2876_v60  ;;  %v3163_v60 = vld [vmem:[#allocation6 + $0x5c8] sm:$0xf] }
  0x8d   :  { %1512 = vmatpush.bf16.msrb.mxu3 %v2604_v2  ;;  %v2525_v2 = vld [vmem:[#allocation6 + $0xd8] sm:$0xf0]  ;;  %v3164_v7 = vor.u32 %v3712_v61, %v3163_v60  ;;  %v3100_v61 = vor.u32 %v3696_v50, %v3099_v49 }
  0x8e   :  { %1525 = vmatpush.bf16.msra.mxu0 %v2732_v14  ;;  %v2528_v12 = vor.u32 %v3550_v0, %v2525_v2  ;;  %v2672_v14 = vor.u32 %v3586_v5, %v2669_v6  ;;  %v2605_v60 = vld [vmem:[#allocation6 + $0x178] sm:$0xf0]  ;;  %v3083_v0 = vld [vmem:[#allocation6 + $0x528] sm:$0xf] }
  0x8f   :  { %1500 = vmatpush.bf16.msrb.mxu1 %v2460_v10  ;;  %v3147_v10 = vld [vmem:[#allocation6 + $0x5a8] sm:$0xf]  ;;  %v2557_v49 = vld [vmem:[#allocation6 + $0x118] sm:$0xf0] }
  0x90   :  { %1538 = vmatpush.bf16.msra.mxu2 %v2860_v9  ;;  %v3676_v9 = vld [vmem:[#allocation6 + $0x4b4] sm:$0xf0]  ;;  %v3148_v19 = vor.u32 %v3708_v11, %v3147_v10  ;;  %v2939_v11 = vld [vmem:[#allocation6 + $0x408] sm:$0xf]  ;;  %v2893_v50 = vld [vmem:[#allocation6 + $0x3b8] sm:$0xf0] }
  0x91   :  { %1513 = vmatpush.bf16.msrb.mxu3 %v2588_v15  ;;  %v3020_v15 = vor.u32 %v3676_v9, %v3019_v8  ;;  %v3566_v8 = vld [vmem:[#allocation6 + $0x14c] sm:$0xf]  ;;  %v2589_v9 = vld [vmem:[#allocation6 + $0x158] sm:$0xf0] }
  0x92   :  { %1526 = vmatpush.bf16.msra.mxu0 %v2716_v27 }
  0x93   :  { %1501 = vmatpush.bf16.msrb.mxu1 %v2444_v23  ;;  %v3704_v23 = vld [vmem:[#allocation6 + $0x594] sm:$0xf0] }
  0x94   :  { %1539 = vmatpush.bf16.msra.mxu2 %v2844_v21  ;;  %v3672_v21 = vld [vmem:[#allocation6 + $0x494] sm:$0xf0]  ;;  %v3132_v32 = vor.u32 %v3704_v23, %v3131_v22  ;;  %v3526_v22 = vld [vmem:[#allocation6 + $0xc] sm:$0xf]  ;;  %v2429_v23 = vld [vmem:[#allocation6 + $0x18] sm:$0xf0] }
  0x95   :  { %1514 = vmatpush.bf16.msrb.mxu3 %v2572_v28  ;;  %v3004_v27 = vor.u32 %v3672_v21, %v3003_v20  ;;  %v2493_v28 = vld [vmem:[#allocation6 + $0x98] sm:$0xf0]  ;;  %v2592_v20 = vor.u32 %v3566_v8, %v2589_v9  ;;  %v3670_v8 = vld [vmem:[#allocation6 + $0x48c] sm:$0xf] }
  0x96   :  { %1527 = vmatpush.bf16.msra.mxu0 %v2700_v43  ;;  %v2496_v38 = vor.u32 %v3542_v25, %v2493_v28  ;;  %v3574_v43 = vld [vmem:[#allocation6 + $0x18c] sm:$0xf]  ;;  %v3005_v9 = vld [vmem:[#allocation6 + $0x498] sm:$0xf0] }
  0x97   :  { %1502 = vmatpush.bf16.msrb.mxu1 %v2428_v41  ;;  %v2988_v41 = vor.u32 %v3668_v34, %v2987_v33  ;;  %v2624_v54 = vor.u32 %v3574_v43, %v2621_v44  ;;  %v3614_v28 = vld [vmem:[#allocation6 + $0x2cc] sm:$0xf]  ;;  %v2573_v33 = vld [vmem:[#allocation6 + $0x138] sm:$0xf0]  ;;  %v2432_v34 = vor.u32 %v3526_v22, %v2429_v23 }
  0x98   :  { %1540 = vmatpush.bf16.msra.mxu2 %v2828_v37  ;;  %v3700_v37 = vld [vmem:[#allocation6 + $0x574] sm:$0xf0]  ;;  %v3610_v43 = vld [vmem:[#allocation6 + $0x2ac] sm:$0xf]  ;;  %v2765_v44 = vld [vmem:[#allocation6 + $0x2b8] sm:$0xf0] }
  0x99   :  { %1515 = vmatpush.bf16.msrb.mxu3 %v2556_v47  ;;  %v3116_v46 = vor.u32 %v3700_v37, %v3115_v36  ;;  %v2971_v47 = vld [vmem:[#allocation6 + $0x448] sm:$0xf]  ;;  %v3646_v36 = vld [vmem:[#allocation6 + $0x3cc] sm:$0xf]  ;;  %v2909_v37 = vld [vmem:[#allocation6 + $0x3d8] sm:$0xf0] }
  0x9a   :  { %1503 = vmatmul.bf16.vlgmr.msrb.gmra.mxu1 %v4051_v55  ;;  %1528 = vmatpush.bf16.msra.mxu0 %v2684_v63  ;;  %v3660_v63 = vld [vmem:[#allocation6 + $0x434] sm:$0xf0] }
  0x9b   :  { %1547 = vmatpush.bf16.msra.mxu1 %v3052_v48  ;;  %v3664_v48 = vld [vmem:[#allocation6 + $0x454] sm:$0xf0] }
  0x9c   :  { %1541 = vmatpush.bf16.msra.mxu2 %v2812_v59  ;;  %1516 = vmatmul.bf16.vlgmr.msrb.gmra.mxu3 %v4057_v4  ;;  %v2972_v56 = vor.u32 %v3664_v48, %v2971_v47  ;;  %v3570_v59 = vld [vmem:[#allocation6 + $0x16c] sm:$0xf] }
  0x9d   :  { %1560 = vmatpush.bf16.msra.mxu3 %v3180_v53  ;;  %1529 = vmatmul.bf16.vlgmr.msra.gmra.mxu0 %v4049_v51  ;;  %v3534_v53 = vld [vmem:[#allocation6 + $0x4c] sm:$0xf]  ;;  %v2608_v5 = vor.u32 %v3570_v59, %v2605_v60  ;;  %v3021_v60 = vld [vmem:[#allocation6 + $0x4b8] sm:$0xf0] }
  0x9e   :  { %1580 = vmatpush.bf16.msrb.mxu0 %v3196_v3  ;;  %v2464_v2 = vor.u32 %v3534_v53, %v2461_v58  ;;  %v3530_v3 = vld [vmem:[#allocation6 + $0x2c] sm:$0xf]  ;;  %v3181_v53 = vld [vmem:[#allocation6 + $0x5f8] sm:$0xf0] }
  0x9f   :  { %1548 = vmatpush.bf16.msra.mxu1 %v3036_v1  ;;  %1542 = vmatmul.bf16.vlgmr.msra.gmra.mxu2 %v4053_v57  ;;  %v3692_v1 = vld [vmem:[#allocation6 + $0x534] sm:$0xf0]  ;;  %v3642_v47 = vld [vmem:[#allocation6 + $0x3ac] sm:$0xf] }
  0xa0   :  { %1586 = vmatpush.bf16.msrb.mxu2 %v2544_v62  ;;  %v2955_v62 = vld [vmem:[#allocation6 + $0x428] sm:$0xf]  ;;  %v3084_v10 = vor.u32 %v3692_v1, %v3083_v0  ;;  %v3558_v48 = vld [vmem:[#allocation6 + $0x10c] sm:$0xf]  ;;  %v2749_v0 = vld [vmem:[#allocation6 + $0x298] sm:$0xf0] }
  0xa1   :  { %1561 = vmatpush.bf16.msra.mxu3 %v3164_v7  ;;  %v2956_v6 = vor.u32 %v3660_v63, %v2955_v62  ;;  %v2445_v7 = vld [vmem:[#allocation6 + $0x38] sm:$0xf0]  ;;  %v2560_v58 = vor.u32 %v3558_v48, %v2557_v49  ;;  %v3674_v59 = vld [vmem:[#allocation6 + $0x4ac] sm:$0xf] }
  0xa2   :  { %1599 = vmatpush.bf16.msra.mxu0 %v2672_v14  ;;  %v3688_v14 = vld [vmem:[#allocation6 + $0x514] sm:$0xf0]  ;;  %v2448_v17 = vor.u32 %v3530_v3, %v2445_v7  ;;  %v3606_v63 = vld [vmem:[#allocation6 + $0x28c] sm:$0xf] }
  0xa3   :  { %1549 = vmatpush.bf16.msra.mxu1 %v3020_v15  ;;  %v3618_v15 = vld [vmem:[#allocation6 + $0x2ec] sm:$0xf]  ;;  %v2752_v7 = vor.u32 %v3606_v63, %v2749_v0  ;;  %v3263_v63 = vld [vmem:[#allocation9 + $0x70] sm:$0xf] }
  0xa4   :  { %1587 = vmatpush.bf16.msrb.mxu2 %v2528_v12  ;;  %v3656_v12 = vld [vmem:[#allocation6 + $0x414] sm:$0xf0]  ;;  %v2800_v25 = vor.u32 %v3618_v15, %v2797_v16  ;;  %v3638_v1 = vld [vmem:[#allocation6 + $0x38c] sm:$0xf]  ;;  %v2861_v15 = vld [vmem:[#allocation6 + $0x378] sm:$0xf0] }
  0xa5   :  { %1562 = vmatpush.bf16.msra.mxu3 %v3148_v19  ;;  %v2925_v19 = vld [vmem:[#allocation6 + $0x3f8] sm:$0xf0]  ;;  %v2940_v21 = vor.u32 %v3656_v12, %v2939_v11  ;;  %v3710_v3 = vld [vmem:[#allocation6 + $0x5cc] sm:$0xf] }
  0xa6   :  { %1600 = vmatpush.bf16.msra.mxu0 %v2656_v26  ;;  %v3682_v26 = vld [vmem:[#allocation6 + $0x4ec] sm:$0xf]  ;;  %v2928_v29 = vor.u32 %v3650_v18, %v2925_v19  ;;  %v3008_v18 = vor.u32 %v3670_v8, %v3005_v9 }
  0xa7   :  { %1550 = vmatpush.bf16.msra.mxu1 %v3004_v27  ;;  %v3053_v27 = vld [vmem:[#allocation6 + $0x4f8] sm:$0xf0]  ;;  %v3602_v12 = vld [vmem:[#allocation6 + $0x26c] sm:$0xf] }
  0xa8   :  { %1588 = vmatpush.bf16.msrb.mxu2 %v2512_v24  ;;  %v3068_v24 = vor.u32 %v3688_v14, %v3067_v13  ;;  %v3634_v13 = vld [vmem:[#allocation6 + $0x36c] sm:$0xf] }
  0xa9   :  { %1563 = vmatpush.bf16.msra.mxu3 %v3132_v32  ;;  %v3562_v32 = vld [vmem:[#allocation6 + $0x12c] sm:$0xf]  ;;  %v2864_v22 = vor.u32 %v3634_v13, %v2861_v15  ;;  %v3197_v15 = vld [vmem:[#allocation6 + $0x618] sm:$0xf0] }
  0xaa   :  { %1601 = vmatpush.bf16.msra.mxu0 %v2640_v40  ;;  %v2784_v40 = vor.u32 %v3614_v28, %v2781_v31  ;;  %v3706_v16 = vld [vmem:[#allocation6 + $0x5ac] sm:$0xf]  ;;  %v2845_v28 = vld [vmem:[#allocation6 + $0x358] sm:$0xf0] }
  0xab   :  { %1551 = vmatpush.bf16.msra.mxu1 %v2988_v41  ;;  %v2576_v41 = vor.u32 %v3562_v32, %v2573_v33  ;;  %v3133_v31 = vld [vmem:[#allocation6 + $0x598] sm:$0xf0]  ;;  %v4093_v33 = vld [vmem:[#allocation8] sm:$0xf]  ;;  %v3694_v0 = vld [vmem:[#allocation6 + $0x54c] sm:$0xf] }
  0xac   :  { %1589 = vmatpush.bf16.msrb.mxu2 %v2496_v38  ;;  %v3056_v38 = vor.u32 %v3682_v26, %v3053_v27  ;;  %v3630_v26 = vld [vmem:[#allocation6 + $0x34c] sm:$0xf]  ;;  %v321_v49 = vperm.slane %v4093_v33, 0 }
  0xad   :  { %1564 = vmatpush.bf16.msra.mxu3 %v3116_v46  ;;  %3203 = vmatmul.msk.bf16.vlgmr.msrb.gmra.mxu0 %vm1309_vm0, %v4061_v45  ;;  %v2912_v46 = vor.u32 %v3646_v36, %v2909_v37  ;;  %v3662_v36 = vld [vmem:[#allocation6 + $0x44c] sm:$0xf]  ;;  %v2973_v37 = vld [vmem:[#allocation6 + $0x458] sm:$0xf0] }
  0xae   :  { %1602 = vmatpush.bf16.msra.mxu0 %v2624_v54  ;;  %v3040_v54 = vor.u32 %v3678_v39, %v3037_v42  ;;  %v2848_v39 = vor.u32 %v3630_v26, %v2845_v28  ;;  %v2701_v42 = vld [vmem:[#allocation6 + $0x238] sm:$0xf0]  ;;  %v3718_v13 = vld [vmem:[#allocation6 + $0x60c] sm:$0xf]  ;;  %v3319_v26 = vld [vmem:[#allocation9 + $0xe0] sm:$0xf] }
  0xaf   :  { %1552 = vmatpush.bf16.msra.mxu1 %v2972_v56  ;;  %v2768_v56 = vor.u32 %v3610_v43, %v2765_v44  ;;  %v3626_v43 = vld [vmem:[#allocation6 + $0x32c] sm:$0xf]  ;;  %v2829_v44 = vld [vmem:[#allocation6 + $0x338] sm:$0xf0] }
  0xb0   :  { %1590 = vmatpush.bf16.msrb.mxu2 %v2480_v52  ;;  %v3714_v52 = vld [vmem:[#allocation6 + $0x5ec] sm:$0xf] }
  0xb1   :  { %1565 = vmatpush.bf16.msra.mxu3 %v3100_v61  ;;  %v2896_v61 = vor.u32 %v3642_v47, %v2893_v50  ;;  %v3184_v62 = vor.u32 %v3714_v52, %v3181_v53  ;;  %v3117_v47 = vld [vmem:[#allocation6 + $0x578] sm:$0xf0]  ;;  %v2976_v50 = vor.u32 %v3662_v36, %v2973_v37  ;;  %v3658_v53 = vld [vmem:[#allocation6 + $0x42c] sm:$0xf]  ;;  %v3247_v36 = vld [vmem:[#allocation9 + $0x50] sm:$0xf] }
  0xb2   :  { %1603 = vmatpush.bf16.msra.mxu0 %v2608_v5  ;;  %v3165_v5 = vld [vmem:[#allocation6 + $0x5d8] sm:$0xf0]  ;;  %v3750_v28 = vld [vmem:[#allocation9 + $0xe4] sm:$0xf0] }
  0xb3   :  { %1553 = vmatpush.bf16.msra.mxu1 %v2956_v6  ;;  %v3024_v6 = vor.u32 %v3674_v59, %v3021_v60  ;;  %v3168_v11 = vor.u32 %v3710_v3, %v3165_v5  ;;  %v2685_v60 = vld [vmem:[#allocation6 + $0x218] sm:$0xf0] }
  0xb4   :  { %1591 = vmatpush.bf16.msrb.mxu2 %v2464_v2  ;;  %v2877_v2 = vld [vmem:[#allocation6 + $0x398] sm:$0xf0] }
  0xb5   :  { %1566 = vmatpush.bf16.msra.mxu3 %v3084_v10  ;;  %v2880_v10 = vor.u32 %v3638_v1, %v2877_v2  ;;  %v3101_v1 = vld [vmem:[#allocation6 + $0x558] sm:$0xf0] }
  0xb6   :  { %1604 = vmatpush.bf16.msra.mxu0 %v2592_v20  ;;  %v4088_v14 = vpop.f32.mrf.mxu0  ;;  %v3666_v20 = vld [vmem:[#allocation6 + $0x46c] sm:$0xf]  ;;  %v3736_v5 = vld [vmem:[#allocation9 + $0x74] sm:$0xf0] }
  0xb7   :  { %1554 = vmatpush.bf16.msra.mxu1 %v2940_v21  ;;  %v2989_v21 = vld [vmem:[#allocation6 + $0x478] sm:$0xf0] }
  0xb8   :  { %1592 = vmatpush.bf16.msrb.mxu2 %v2448_v17  ;;  %v3149_v17 = vld [vmem:[#allocation6 + $0x5b8] sm:$0xf0]  ;;  %v2992_v32 = vor.u32 %v3666_v20, %v2989_v21 }
  0xb9   :  { %1567 = vmatpush.bf16.msra.mxu3 %v3068_v24  ;;  %v3152_v23 = vor.u32 %v3706_v16, %v3149_v17  ;;  %v3598_v24 = vld [vmem:[#allocation6 + $0x24c] sm:$0xf]  ;;  %v1323_v17 = vadd.f32 %v4088_v14, %v321_v49  ;;  %v3085_v20 = vld [vmem:[#allocation6 + $0x538] sm:$0xf0] }
  0xba   :  { %1555 = vmatmul.bf16.vlgmr.msra.gmra.mxu1 %v4065_v30  ;;  %1605 = vmatpush.bf16.msra.mxu0 %v2576_v41  ;;  %v3594_v41 = vld [vmem:[#allocation6 + $0x22c] sm:$0xf]  ;;  %v3732_v37 = vld [vmem:[#allocation9 + $0x54] sm:$0xf0] }
  0xbb   :  { %1612 = vmatpush.bf16.msrb.mxu1 %v2800_v25  ;;  %v2717_v25 = vld [vmem:[#allocation6 + $0x258] sm:$0xf0]  ;;  %v2704_v52 = vor.u32 %v3594_v41, %v2701_v42  ;;  %v3686_v14 = vld [vmem:[#allocation6 + $0x50c] sm:$0xf]  ;;  %v3311_v41 = vld [vmem:[#allocation9 + $0xd0] sm:$0xf] }
  0xbc   :  { %1593 = vmatpush.bf16.msrb.mxu2 %v2432_v34  ;;  %1568 = vmatmul.bf16.vlgmr.msra.gmra.mxu3 %v4067_v35  ;;  %v2720_v34 = vor.u32 %v3598_v24, %v2717_v25  ;;  %v3734_v24 = vld [vmem:[#allocation9 + $0x64] sm:$0xf0]  ;;  %v3200_v25 = vor.u32 %v3718_v13, %v3197_v15  ;;  %v3748_v42 = vld [vmem:[#allocation9 + $0xd4] sm:$0xf0]  ;;  %v3207_v15 = vld [vmem:[#allocation9] sm:$0xf] }
  0xbd   :  { %1625 = vmatpush.bf16.msrb.mxu3 %v2928_v29  ;;  %v4091_v27 = vpop.f32.mrf.mxu1  ;;  %v3702_v29 = vld [vmem:[#allocation6 + $0x58c] sm:$0xf] }
  0xbe   :  { %1606 = vmatpush.bf16.msra.mxu0 %v2560_v58  ;;  %v1324_v48 = vpop.f32.mrf.mxu0  ;;  %v2832_v58 = vor.u32 %v3626_v43, %v2829_v44  ;;  %v3248_v44 = vor.u32 %v3732_v37, %v3247_v36  ;;  %v3746_v49 = vld [vmem:[#allocation9 + $0xc4] sm:$0xf0]  ;;  %v3749_v36 = vld [vmem:[#allocation9 + $0xe4] sm:$0xf]  ;;  %v3321_v37 = vld [vmem:[#allocation9 + $0xe8] sm:$0xf0] }
  0xbf   :  { %1613 = vmatpush.bf16.msrb.mxu1 %v2784_v40  ;;  %1594 = vmatmul.bf16.vlgmr.msrb.gmra.mxu2 %v4051_v55  ;;  %v2733_v55 = vld [vmem:[#allocation6 + $0x278] sm:$0xf0]  ;;  %v3136_v40 = vor.u32 %v3702_v29, %v3133_v31  ;;  %v1336_v31 = vadd.f32 %v4091_v27, %v1323_v17  ;;  %v3303_v48 = vld [vmem:[#allocation9 + $0xc0] sm:$0xf]  ;;  %v3722_v17 = vld [vmem:[#allocation9 + $0x4] sm:$0xf0] }
  0xc0   :  { %1638 = vmatpush.bf16.msra.mxu2 %v3056_v38  ;;  %v2736_v19 = vor.u32 %v3602_v12, %v2733_v55  ;;  %v3104_v55 = vor.u32 %v3694_v0, %v3101_v1  ;;  %v3726_v0 = vld [vmem:[#allocation9 + $0x24] sm:$0xf0]  ;;  %v3287_v1 = vld [vmem:[#allocation9 + $0xa0] sm:$0xf] }
  0xc1   :  { %1626 = vmatpush.bf16.msrb.mxu3 %v2912_v46  ;;  %1607 = vmatmul.bf16.vlgmr.msra.gmra.mxu0 %v4057_v4  ;;  %v4095_v4 = vpop.f32.mrf.mxu2  ;;  %v4097_v38 = vpop.f32.mrf.mxu3  ;;  %v3698_v46 = vld [vmem:[#allocation6 + $0x56c] sm:$0xf] }
  0xc2   :  { %1651 = vmatpush.bf16.msrb.mxu0 %v3184_v62  ;;  %v3120_v59 = vor.u32 %v3698_v46, %v3117_v47  ;;  %v2813_v62 = vld [vmem:[#allocation6 + $0x318] sm:$0xf0]  ;;  %v1349_v27 = vadd.f32 %v4095_v4, %v1336_v31  ;;  %v3239_v46 = vld [vmem:[#allocation9 + $0x40] sm:$0xf]  ;;  %v3312_v47 = vor.u32 %v3748_v42, %v3311_v41  ;;  %v3304_v4 = vor.u32 %v3746_v49, %v3303_v48  ;;  %v3731_v42 = vld [vmem:[#allocation9 + $0x54] sm:$0xf] }
  0xc3   :  { %1614 = vmatpush.bf16.msrb.mxu1 %v2768_v56  ;;  %v3590_v56 = vld [vmem:[#allocation6 + $0x20c] sm:$0xf]  ;;  %v3729_v49 = vld [vmem:[#allocation9 + $0x44] sm:$0xf] }
  0xc4   :  { %1639 = vmatpush.bf16.msra.mxu2 %v3040_v54  ;;  %v2957_v54 = vld [vmem:[#allocation6 + $0x438] sm:$0xf0]  ;;  %v2688_v9 = vor.u32 %v3590_v56, %v2685_v60 }
  0xc5   :  { %1627 = vmatpush.bf16.msrb.mxu3 %v2896_v61  ;;  %v3622_v61 = vld [vmem:[#allocation6 + $0x30c] sm:$0xf]  ;;  %v1337_v2 = vpop.f32.mrf.mxu1  ;;  %v2960_v3 = vor.u32 %v3658_v53, %v2957_v54  ;;  %v3231_v53 = vld [vmem:[#allocation9 + $0x30] sm:$0xf]  ;;  %v3728_v54 = vld [vmem:[#allocation9 + $0x34] sm:$0xf0] }
  0xc6   :  { %1652 = vmatpush.bf16.msrb.mxu0 %v3168_v11  ;;  %v2941_v11 = vld [vmem:[#allocation6 + $0x418] sm:$0xf0]  ;;  %v2816_v12 = vor.u32 %v3622_v61, %v2813_v62  ;;  %v3232_v61 = vor.u32 %v3728_v54, %v3231_v53  ;;  %v3742_v2 = vld [vmem:[#allocation9 + $0xa4] sm:$0xf0]  ;;  %v3383_v54 = vld [vmem:[#allocation9 + $0x160] sm:$0xf] }
  0xc7   :  { %1615 = vmatpush.bf16.msrb.mxu1 %v2752_v7  ;;  %v3752_v7 = vld [vmem:[#allocation9 + $0xf4] sm:$0xf0] }
  0xc8   :  { %1640 = vmatpush.bf16.msra.mxu2 %v3024_v6  ;;  %v3327_v6 = vld [vmem:[#allocation9 + $0xf0] sm:$0xf]  ;;  %v3744_v60 = vld [vmem:[#allocation9 + $0xb4] sm:$0xf0] }
  0xc9   :  { %1628 = vmatpush.bf16.msrb.mxu3 %v2880_v10  ;;  %v1350_v8 = vpop.f32.mrf.mxu2  ;;  %v3654_v10 = vld [vmem:[#allocation6 + $0x40c] sm:$0xf]  ;;  %v1363_v16 = vpop.f32.mrf.mxu3  ;;  %v3328_v21 = vor.u32 %v3752_v7, %v3327_v6  ;;  %v3215_v6 = vld [vmem:[#allocation9 + $0x10] sm:$0xf]  ;;  %v3724_v7 = vld [vmem:[#allocation9 + $0x14] sm:$0xf0] }
  0xca   :  { %1653 = vmatpush.bf16.msrb.mxu0 %v3152_v23  ;;  %v3255_v23 = vld [vmem:[#allocation9 + $0x60] sm:$0xf]  ;;  %v3216_v13 = vor.u32 %v3724_v7, %v3215_v6 }
  0xcb   :  { %1616 = vmatpush.bf16.msrb.mxu1 %v2736_v19  ;;  %v3690_v19 = vld [vmem:[#allocation6 + $0x52c] sm:$0xf] }
  0xcc   :  { %1641 = vmatpush.bf16.msra.mxu2 %v3008_v18  ;;  %v3264_v18 = vor.u32 %v3736_v5, %v3263_v63  ;;  %v3088_v29 = vor.u32 %v3690_v19, %v3085_v20  ;;  %v3223_v63 = vld [vmem:[#allocation9 + $0x20] sm:$0xf]  ;;  %v3265_v20 = vld [vmem:[#allocation9 + $0x78] sm:$0xf0] }
  0xcd   :  { %1629 = vmatpush.bf16.msrb.mxu3 %v2864_v22  ;;  %v2944_v22 = vor.u32 %v3654_v10, %v2941_v11  ;;  %v3279_v11 = vld [vmem:[#allocation9 + $0x90] sm:$0xf] }
  0xce   :  { %1654 = vmatpush.bf16.msrb.mxu0 %v3136_v40 }
  0xcf   :  { %1617 = vmatpush.bf16.msrb.mxu1 %v2720_v34  ;;  %v3069_v34 = vld [vmem:[#allocation6 + $0x518] sm:$0xf0] }
  0xd0   :  { %1642 = vmatpush.bf16.msra.mxu2 %v2992_v32  ;;  %v3256_v32 = vor.u32 %v3734_v24, %v3255_v23  ;;  %v3072_v43 = vor.u32 %v3686_v14, %v3069_v34  ;;  %v3751_v23 = vld [vmem:[#allocation9 + $0xf4] sm:$0xf]  ;;  %v3329_v24 = vld [vmem:[#allocation9 + $0xf8] sm:$0xf0] }
  0xd1   :  { %1630 = vmatpush.bf16.msrb.mxu3 %v2848_v39  ;;  %v3320_v39 = vor.u32 %v3750_v28, %v3319_v26  ;;  %v1400_v40 = vpop.f32.mrf.mxu2  ;;  %v3332_v14 = vor.u32 %v3751_v23, %v3329_v24  ;;  %v3367_v24 = vld [vmem:[#allocation9 + $0x140] sm:$0xf] }
  0xd2   :  { %1655 = vmatpush.bf16.msrb.mxu0 %v3120_v59  ;;  %v3295_v59 = vld [vmem:[#allocation9 + $0xb0] sm:$0xf] }
  0xd3   :  { %1618 = vmatpush.bf16.msrb.mxu1 %v2704_v52 }
  0xd4   :  { %1643 = vmatpush.bf16.msra.mxu2 %v2976_v50 }
  0xd5   :  { %1631 = vmatpush.bf16.msrb.mxu3 %v2832_v58 }
  0xd6   :  { %1656 = vmatpush.bf16.msrb.mxu0 %v3104_v55  ;;  %v1374_v52 = vpop.f32.mrf.mxu0 }
  0xd7   :  { %1619 = vmatpush.bf16.msrb.mxu1 %v2688_v9  ;;  %v1387_v58 = vpop.f32.mrf.mxu1 }
  0xd8   :  { %1644 = vmatpush.bf16.msra.mxu2 %v2960_v3  ;;  %v3224_v3 = vor.u32 %v3726_v0, %v3223_v63  ;;  %v3727_v63 = vld [vmem:[#allocation9 + $0x34] sm:$0xf]  ;;  %v3233_v0 = vld [vmem:[#allocation9 + $0x38] sm:$0xf0] }
  0xd9   :  { %1632 = vmatpush.bf16.msrb.mxu3 %v2816_v12  ;;  %v3740_v12 = vld [vmem:[#allocation9 + $0x94] sm:$0xf0]  ;;  %v3236_v7 = vor.u32 %v3727_v63, %v3233_v0  ;;  %v3765_v0 = vld [vmem:[#allocation9 + $0x164] sm:$0xf] }
  0xda   :  { %1620 = vmatmul.bf16.vlgmr.msrb.gmra.mxu1 %v4049_v51  ;;  %1657 = vmatpush.bf16.msrb.mxu0 %v3088_v29  ;;  %v3730_v51 = vld [vmem:[#allocation9 + $0x44] sm:$0xf0]  ;;  %v3280_v19 = vor.u32 %v3740_v12, %v3279_v11  ;;  %v3741_v11 = vld [vmem:[#allocation9 + $0xa4] sm:$0xf]  ;;  %v3289_v12 = vld [vmem:[#allocation9 + $0xa8] sm:$0xf0] }
  0xdb   :  { %2092 = vmatpush.bf16.msra.mxu1 %v3328_v21  ;;  %v3240_v50 = vor.u32 %v3730_v51, %v3239_v46  ;;  %v3271_v21 = vld [vmem:[#allocation9 + $0x80] sm:$0xf]  ;;  %v3313_v46 = vld [vmem:[#allocation9 + $0xd8] sm:$0xf0] }
  0xdc   :  { %1645 = vmatpush.bf16.msra.mxu2 %v2944_v22  ;;  %1633 = vmatmul.bf16.vlgmr.msrb.gmra.mxu3 %v4053_v57  ;;  %v1362_v57 = vadd.f32 %v4097_v38, %v1349_v27  ;;  %v3296_v38 = vor.u32 %v3744_v60, %v3295_v59  ;;  %v3738_v22 = vld [vmem:[#allocation9 + $0x84] sm:$0xf0]  ;;  %v3324_v27 = vor.u32 %v3749_v36, %v3321_v37  ;;  %v3737_v36 = vld [vmem:[#allocation9 + $0x84] sm:$0xf]  ;;  %v3273_v37 = vld [vmem:[#allocation9 + $0x88] sm:$0xf0] }
  0xdd   :  { %2079 = vmatpush.bf16.msra.mxu3 %v3264_v18  ;;  %v3735_v18 = vld [vmem:[#allocation9 + $0x74] sm:$0xf]  ;;  %v3272_v31 = vor.u32 %v3738_v22, %v3271_v21  ;;  %v3281_v21 = vld [vmem:[#allocation9 + $0x98] sm:$0xf0] }
  0xde   :  { %1658 = vmatpush.bf16.msrb.mxu0 %v3072_v43  ;;  %v1375_v56 = vadd.f32 %v1374_v52, %v1362_v57  ;;  %v1376_v8 = vpop.f32.mrf.mxu0  ;;  %v3268_v28 = vor.u32 %v3735_v18, %v3265_v20  ;;  %v3249_v43 = vld [vmem:[#allocation9 + $0x58] sm:$0xf0]  ;;  %v3768_v57 = vld [vmem:[#allocation9 + $0x174] sm:$0xf0]  ;;  %v3292_v18 = vor.u32 %v3741_v11, %v3289_v12  ;;  %v3739_v20 = vld [vmem:[#allocation9 + $0x94] sm:$0xf] }
  0xdf   :  { %1646 = vmatmul.bf16.vlgmr.msra.gmra.mxu2 %v4065_v30  ;;  %2093 = vmatpush.bf16.msra.mxu1 %v3320_v39  ;;  %v1402_v30 = vpop.f32.mrf.mxu2  ;;  %v1413_v9 = vpop.f32.mrf.mxu3  ;;  %v322_v39 = vperm.slane %v4093_v33, 1  ;;  %v3252_v48 = vor.u32 %v3731_v42, %v3249_v43  ;;  %v3725_v8 = vld [vmem:[#allocation9 + $0x24] sm:$0xf]  ;;  %v3351_v42 = vld [vmem:[#allocation9 + $0x120] sm:$0xf] }
  0xe0   :  { %1671 = vmatpush.bf16.msrb.mxu2 %v3200_v25  ;;  %v1388_v62 = vadd.f32 %v1387_v58, %v1375_v56  ;;  %v1389_v10 = vpop.f32.mrf.mxu1  ;;  %v3208_v25 = vor.u32 %v3722_v17, %v3207_v15  ;;  %v3745_v56 = vld [vmem:[#allocation9 + $0xc4] sm:$0xf]  ;;  %v3305_v58 = vld [vmem:[#allocation9 + $0xc8] sm:$0xf0]  ;;  %v3217_v17 = vld [vmem:[#allocation9 + $0x18] sm:$0xf0] }
  0xe1   :  { %2080 = vmatpush.bf16.msra.mxu3 %v3256_v32  ;;  %1659 = vmatmul.bf16.vlgmr.msrb.gmra.mxu0 %v4067_v35  ;;  %v3288_v35 = vor.u32 %v3742_v2, %v3287_v1  ;;  %v3257_v32 = vld [vmem:[#allocation9 + $0x68] sm:$0xf0]  ;;  %v1414_v51 = vadd.f32 %v1413_v9, %v322_v39  ;;  %v3743_v2 = vld [vmem:[#allocation9 + $0xb4] sm:$0xf]  ;;  %v3758_v43 = vld [vmem:[#allocation9 + $0x124] sm:$0xf0] }
  0xe2   :  { %v1401_v5 = vadd.f32 %v1400_v40, %v1388_v62  ;;  %v3764_v62 = vld [vmem:[#allocation9 + $0x154] sm:$0xf0]  ;;  %v3225_v9 = vld [vmem:[#allocation9 + $0x28] sm:$0xf0]  ;;  %v3759_v12 = vld [vmem:[#allocation9 + $0x134] sm:$0xf] }
  0xe3   :  { %2094 = vmatpush.bf16.msra.mxu1 %v3312_v47  ;;  %v3391_v47 = vld [vmem:[#allocation9 + $0x170] sm:$0xf] }
  0xe4   :  { %v1677_v16 = vmul.f32 0.2, %v1401_v5  ;;  %v3392_v53 = vor.u32 %v3768_v57, %v3391_v47  ;;  %v3352_v47 = vor.u32 %v3758_v43, %v3351_v42  ;;  %v3343_v57 = vld [vmem:[#allocation9 + $0x110] sm:$0xf]  ;;  %v3431_v43 = vld [vmem:[#allocation9 + $0x1c0] sm:$0xf] }
  0xe5   :  { %2081 = vmatpush.bf16.msra.mxu3 %v3248_v44  ;;  %v3747_v44 = vld [vmem:[#allocation9 + $0xd4] sm:$0xf] }
  0xe6   :  { %v1681_v26 = vmax.f32 %v1401_v5, %v1677_v16  ;;  %v3316_v52 = vor.u32 %v3747_v44, %v3313_v46  ;;  %2105 = vmatpush.bf16.msra.mxu2 %v3392_v53  ;;  %v3723_v16 = vld [vmem:[#allocation9 + $0x14] sm:$0xf]  ;;  %v3276_v44 = vor.u32 %v3737_v36, %v3273_v37 }
  0xe7   :  { %2095 = vmatpush.bf16.msra.mxu1 %v3304_v4  ;;  %v1426_v55 = vpop.f32.mrf.mxu2  ;;  %v1415_v29 = vpop.f32.mrf.mxu3  ;;  %v3766_v4 = vld [vmem:[#allocation9 + $0x164] sm:$0xf0] }
  0xe8   :  { %v4111_v40 = vpack.c.bf16 %v1681_v26, %v1681_v26  ;;  %v1427_v30 = vadd.f32 %v1426_v55, %v1414_v51  ;;  %v3384_v59 = vor.u32 %v3766_v4, %v3383_v54  ;;  %v3220_v26 = vor.u32 %v3723_v16, %v3217_v17  ;;  %v3359_v29 = vld [vmem:[#allocation9 + $0x130] sm:$0xf]  ;;  %v3784_v16 = vld [vmem:[#allocation9 + $0x1f4] sm:$0xf0] }
  0xe9   :  { %2082 = vmatpush.bf16.msra.mxu3 %v3240_v50  ;;  %v3241_v50 = vld [vmem:[#allocation9 + $0x48] sm:$0xf0] }
  0xea   :  { %v3244_v60 = vor.u32 %v3729_v49, %v3241_v50  ;;  %2106 = vmatpush.bf16.msra.mxu2 %v3384_v59  ;;  %v3756_v50 = vld [vmem:[#allocation9 + $0x114] sm:$0xf0] }
  0xeb   :  { %2096 = vmatpush.bf16.msra.mxu1 %v3296_v38  ;;  %v3308_v38 = vor.u32 %v3745_v56, %v3305_v58  ;;  %v3344_v53 = vor.u32 %v3756_v50, %v3343_v57  ;;  %v3335_v58 = vld [vmem:[#allocation9 + $0x100] sm:$0xf] }
  0xed   :  { %2083 = vmatpush.bf16.msra.mxu3 %v3232_v61  ;;  %v3375_v61 = vld [vmem:[#allocation9 + $0x150] sm:$0xf] }
  0xee   :  { %v3376_v6 = vor.u32 %v3764_v62, %v3375_v61  ;;  %v3393_v61 = vld [vmem:[#allocation9 + $0x178] sm:$0xf0] }
  0xef   :  { %3204 = vmatmul.msk.bf16.vlgmr.msrb.gmra.mxu2 %vm1309_vm0, %v4061_v45  ;;  %2097 = vmatpush.bf16.msra.mxu1 %v3288_v35  ;;  %v3733_v45 = vld [vmem:[#allocation9 + $0x64] sm:$0xf]  ;;  %v1428_v34 = vpop.f32.mrf.mxu2 }
  0xf0   :  { %v3260_v41 = vor.u32 %v3733_v45, %v3257_v32  ;;  %2107 = vmatpush.bf16.msra.mxu2 %v3376_v6  ;;  %v3721_v45 = vld [vmem:[#allocation9 + $0x4] sm:$0xf]  ;;  %v3209_v32 = vld [vmem:[#allocation9 + $0x8] sm:$0xf0] }
  0xf1   :  { %2084 = vmatpush.bf16.msra.mxu3 %v3224_v3  ;;  %v3297_v3 = vld [vmem:[#allocation9 + $0xb8] sm:$0xf0] }
  0xf2   :  { %v3300_v35 = vor.u32 %v3743_v2, %v3297_v3  ;;  %v3763_v3 = vld [vmem:[#allocation9 + $0x154] sm:$0xf] }
  0xf3   :  { %2098 = vmatpush.bf16.msra.mxu1 %v3280_v19 }
  0xf5   :  { %2085 = vmatpush.bf16.msra.mxu3 %v3216_v13  ;;  %v3228_v13 = vor.u32 %v3725_v8, %v3225_v9  ;;  %v3761_v8 = vld [vmem:[#allocation9 + $0x144] sm:$0xf]  ;;  %v3369_v9 = vld [vmem:[#allocation9 + $0x148] sm:$0xf0] }
  0xf6   :  { %v1439_v1 = vpop.f32.mrf.mxu0 }
  0xf7   :  { %2099 = vmatpush.bf16.msra.mxu1 %v3272_v31  ;;  %v1440_v5 = vadd.f32 %v1439_v1, %v1427_v30  ;;  %v1452_v10 = vpop.f32.mrf.mxu1  ;;  %v3760_v31 = vld [vmem:[#allocation9 + $0x134] sm:$0xf0]  ;;  %v3754_v30 = vld [vmem:[#allocation9 + $0x104] sm:$0xf0] }
  0xf8   :  { %v3360_v39 = vor.u32 %v3760_v31, %v3359_v29  ;;  %v3336_v59 = vor.u32 %v3754_v30, %v3335_v58  ;;  %v3439_v31 = vld [vmem:[#allocation9 + $0x1d0] sm:$0xf] }
  0xf9   :  { %2086 = vmatpush.bf16.msra.mxu3 %v3208_v25  ;;  %v1453_v55 = vadd.f32 %v1452_v10, %v1440_v5  ;;  %v3762_v25 = vld [vmem:[#allocation9 + $0x144] sm:$0xf0]  ;;  %v3372_v10 = vor.u32 %v3761_v8, %v3369_v9 }
  0xfb   :  { %2144 = vmatpush.bf16.msrb.mxu1 %v3332_v14  ;;  %v3284_v14 = vor.u32 %v3739_v20, %v3281_v21  ;;  %v3447_v20 = vld [vmem:[#allocation9 + $0x1e0] sm:$0xf] }
  0xfc   :  { %2087 = vmatmul.bf16.vlgmr.msra.gmra.mxu3 %v4111_v40 }
  0xfd   :  { %2131 = vmatpush.bf16.msrb.mxu3 %v3268_v28  ;;  %v3368_v28 = vor.u32 %v3762_v25, %v3367_v24 }
  0xfe   :  { %v1441_v19 = vpop.f32.mrf.mxu0 }
  0xff   :  { %2145 = vmatpush.bf16.msrb.mxu1 %v3324_v27  ;;  %v1465_v15 = vpop.f32.mrf.mxu3  ;;  %v1454_v34 = vpop.f32.mrf.mxu1  ;;  %2108 = vmatpush.bf16.msra.mxu2 %v3368_v28  ;;  %v3212_v27 = vor.u32 %v3721_v45, %v3209_v32  ;;  %v3353_v19 = vld [vmem:[#allocation9 + $0x128] sm:$0xf0]  ;;  %v3345_v28 = vld [vmem:[#allocation9 + $0x118] sm:$0xf0]  ;;  %v3780_v45 = vld [vmem:[#allocation9 + $0x1d4] sm:$0xf0] }
 0x100   :  { %v1466_v22 = vadd.f32 %v1465_v15, %v1453_v55  ;;  %v3361_v55 = vld [vmem:[#allocation9 + $0x138] sm:$0xf0]  ;;  %v3455_v15 = vld [vmem:[#allocation9 + $0x1f0] sm:$0xf]  ;;  %v3440_v36 = vor.u32 %v3780_v45, %v3439_v31 }
 0x101   :  { %2132 = vmatpush.bf16.msrb.mxu3 %v3260_v41  ;;  %v3456_v17 = vor.u32 %v3784_v16, %v3455_v15  ;;  %v3441_v15 = vld [vmem:[#allocation9 + $0x1d8] sm:$0xf0] }
 0x102   :  { %v1478_v23 = vpop.f32.mrf.mxu2 }
 0x103   :  { %2146 = vmatpush.bf16.msrb.mxu1 %v3316_v52  ;;  %v1479_v41 = vadd.f32 %v1478_v23, %v1466_v22  ;;  %2109 = vmatpush.bf16.msra.mxu2 %v3360_v39  ;;  %v3782_v22 = vld [vmem:[#allocation9 + $0x1e4] sm:$0xf0]  ;;  %v323_v23 = vperm.slane %v4093_v33, 2  ;;  %v3753_v39 = vld [vmem:[#allocation9 + $0x104] sm:$0xf] }
 0x104   :  { %2118 = vmatpush.bf16.msra.mxu0 %v3456_v17  ;;  %v3448_v25 = vor.u32 %v3782_v22, %v3447_v20  ;;  %v3777_v17 = vld [vmem:[#allocation9 + $0x1c4] sm:$0xf]  ;;  %v3425_v22 = vld [vmem:[#allocation9 + $0x1b8] sm:$0xf0] }
 0x105   :  { %2133 = vmatpush.bf16.msrb.mxu3 %v3252_v48 }
 0x106   :  { %v1491_v51 = vpop.f32.mrf.mxu0 }
 0x107   :  { %2147 = vmatpush.bf16.msrb.mxu1 %v3308_v38  ;;  %v1467_v46 = vpop.f32.mrf.mxu3  ;;  %v1492_v48 = vadd.f32 %v1491_v51, %v1479_v41  ;;  %2110 = vmatpush.bf16.msra.mxu2 %v3352_v47  ;;  %v3385_v38 = vld [vmem:[#allocation9 + $0x168] sm:$0xf0] }
 0x108   :  { %v3388_v1 = vor.u32 %v3765_v0, %v3385_v38  ;;  %2119 = vmatpush.bf16.msra.mxu0 %v3448_v25  ;;  %v3337_v41 = vld [vmem:[#allocation9 + $0x108] sm:$0xf0]  ;;  %v3773_v25 = vld [vmem:[#allocation9 + $0x1a4] sm:$0xf] }
 0x109   :  { %2134 = vmatpush.bf16.msrb.mxu3 %v3244_v60  ;;  %v1678_v52 = vmul.f32 0.2, %v1492_v48  ;;  %v3767_v60 = vld [vmem:[#allocation9 + $0x174] sm:$0xf]  ;;  %v3340_v42 = vor.u32 %v3753_v39, %v3337_v41  ;;  %v3769_v41 = vld [vmem:[#allocation9 + $0x184] sm:$0xf] }
 0x10a   :  { %v1480_v49 = vpop.f32.mrf.mxu2  ;;  %v3396_v62 = vor.u32 %v3767_v60, %v3393_v61  ;;  %v3407_v61 = vld [vmem:[#allocation9 + $0x190] sm:$0xf] }
 0x10b   :  { %2148 = vmatpush.bf16.msrb.mxu1 %v3300_v35  ;;  %v1682_v54 = vmax.f32 %v1492_v48, %v1678_v52  ;;  %2111 = vmatpush.bf16.msra.mxu2 %v3344_v53  ;;  %v3423_v48 = vld [vmem:[#allocation9 + $0x1b0] sm:$0xf]  ;;  %v3776_v49 = vld [vmem:[#allocation9 + $0x1b4] sm:$0xf0]  ;;  %v3415_v52 = vld [vmem:[#allocation9 + $0x1a0] sm:$0xf] }
 0x10c   :  { %2120 = vmatpush.bf16.msra.mxu0 %v3440_v36  ;;  %v3424_v57 = vor.u32 %v3776_v49, %v3423_v48  ;;  %v3774_v53 = vld [vmem:[#allocation9 + $0x1a4] sm:$0xf0]  ;;  %v3409_v36 = vld [vmem:[#allocation9 + $0x198] sm:$0xf0] }
 0x10d   :  { %2135 = vmatpush.bf16.msrb.mxu3 %v3236_v7  ;;  %v1686_v4 = vpack.c.bf16 %v1682_v54, %v1682_v54 }
 0x10e   :  { %v1493_v56 = vpop.f32.mrf.mxu0 }
 0x10f   :  { %2149 = vmatpush.bf16.msrb.mxu1 %v3292_v18  ;;  %2112 = vmatpush.bf16.msra.mxu2 %v3336_v59  ;;  %v3757_v18 = vld [vmem:[#allocation9 + $0x124] sm:$0xf] }
 0x110   :  { %2100 = vmatmul.bf16.vlgmr.msra.gmra.mxu1 %v1686_v4  ;;  %v3356_v21 = vor.u32 %v3757_v18, %v3353_v19  ;;  %v3433_v18 = vld [vmem:[#allocation9 + $0x1c8] sm:$0xf0] }
 0x111   :  { %2136 = vmatpush.bf16.msrb.mxu3 %v3228_v13  ;;  %v3364_v13 = vor.u32 %v3759_v12, %v3361_v55  ;;  %v3436_v19 = vor.u32 %v3777_v17, %v3433_v18  ;;  %v3797_v17 = vld [vmem:[#allocation11 + $0x60] sm:$0xff] }
 0x113   :  { %2150 = vmatpush.bf16.msrb.mxu1 %v3284_v14  ;;  %2157 = vmatpush.bf16.msrb.mxu2 %v3396_v62  ;;  %v3772_v62 = vld [vmem:[#allocation9 + $0x194] sm:$0xf0] }
 0x114   :  { %v3408_v0 = vor.u32 %v3772_v62, %v3407_v61 }
 0x115   :  { %2137 = vmatpush.bf16.msrb.mxu3 %v3220_v26  ;;  %v3755_v26 = vld [vmem:[#allocation9 + $0x114] sm:$0xf] }
 0x116   :  { %v3348_v14 = vor.u32 %v3755_v26, %v3345_v28  ;;  %v3417_v26 = vld [vmem:[#allocation9 + $0x1a8] sm:$0xf0] }
 0x117   :  { %2151 = vmatpush.bf16.msrb.mxu1 %v3276_v44  ;;  %v1504_v63 = vpop.f32.mrf.mxu1  ;;  %2158 = vmatpush.bf16.msrb.mxu2 %v3388_v1  ;;  %v3399_v1 = vld [vmem:[#allocation9 + $0x180] sm:$0xf]  ;;  %v3420_v28 = vor.u32 %v3773_v25, %v3417_v26 }
 0x118   :  { %v1505_v34 = vadd.f32 %v1504_v63, %v323_v23 }
 0x119   :  { %2138 = vmatpush.bf16.msrb.mxu3 %v3212_v27  ;;  %v3778_v27 = vld [vmem:[#allocation9 + $0x1c4] sm:$0xf0] }
 0x11a   :  { %v1530_v2 = vpop.f32.mrf.mxu0  ;;  %v3432_v44 = vor.u32 %v3778_v27, %v3431_v43 }
 0x11c   :  { %2139 = vmatmul.bf16.vlgmr.msrb.gmra.mxu3 %v4111_v40  ;;  %v3377_v40 = vld [vmem:[#allocation9 + $0x158] sm:$0xf0]  ;;  %2121 = vmatpush.bf16.msra.mxu0 %v3432_v44 }
 0x11d   :  { %v3380_v5 = vor.u32 %v3763_v3, %v3377_v40 }
 0x11f   :  { %v1506_v6 = vpop.f32.mrf.mxu1  ;;  %2159 = vmatpush.bf16.msrb.mxu2 %v3380_v5  ;;  %v1517_v35 = vpop.f32.mrf.mxu3  ;;  %v3783_v5 = vld [vmem:[#allocation9 + $0x1f4] sm:$0xf] }
 0x120   :  { %2152 = vmatmul.bf16.vlgmr.msrb.gmra.mxu1 %v1686_v4  ;;  %v1518_v37 = vadd.f32 %v1517_v35, %v1505_v34  ;;  %2122 = vmatpush.bf16.msra.mxu0 %v3424_v57  ;;  %v3416_v4 = vor.u32 %v3774_v53, %v3415_v52  ;;  %v3457_v6 = vld [vmem:[#allocation9 + $0x1f8] sm:$0xf0]  ;;  %v3449_v35 = vld [vmem:[#allocation9 + $0x1e8] sm:$0xf0]  ;;  %v3771_v34 = vld [vmem:[#allocation9 + $0x194] sm:$0xf] }
 0x121   :  { %v3460_v9 = vor.u32 %v3783_v5, %v3457_v6  ;;  %v3792_v5 = vld [vmem:[#allocation11 + $0x38] sm:$0xff]  ;;  %v3791_v6 = vld [vmem:[#allocation11 + $0x30] sm:$0xff] }
 0x122   :  { %v1543_v7 = vpop.f32.mrf.mxu2  ;;  %v1532_v11 = vpop.f32.mrf.mxu0  ;;  %v1531_v51 = vadd.f32 %v1530_v2, %v1518_v37  ;;  %v3770_v2 = vld [vmem:[#allocation9 + $0x184] sm:$0xf0]  ;;  %v3412_v37 = vor.u32 %v3771_v34, %v3409_v36  ;;  %2321 = vmatpush.bf16.msra.mxu3 %v3792_v5 }
 0x123   :  { %2160 = vmatpush.bf16.msrb.mxu2 %v3372_v10  ;;  %v3400_v40 = vor.u32 %v3770_v2, %v3399_v1 }
 0x124   :  { %v1544_v50 = vadd.f32 %v1543_v7, %v1531_v51  ;;  %2123 = vmatpush.bf16.msra.mxu0 %v3416_v4  ;;  %v3781_v7 = vld [vmem:[#allocation9 + $0x1e4] sm:$0xf] }
 0x125   :  { %v3452_v55 = vor.u32 %v3781_v7, %v3449_v35  ;;  %v3790_v7 = vld [vmem:[#allocation11 + $0x28] sm:$0xff]  ;;  %v3799_v35 = vld [vmem:[#allocation11 + $0x70] sm:$0xff] }
 0x126   :  { %2322 = vmatpush.bf16.msra.mxu3 %v3791_v6 }
 0x127   :  { %2161 = vmatpush.bf16.msrb.mxu2 %v3364_v13  ;;  %v1519_v29 = vpop.f32.mrf.mxu3  ;;  %v3779_v13 = vld [vmem:[#allocation9 + $0x1d4] sm:$0xf] }
 0x128   :  { %2124 = vmatpush.bf16.msra.mxu0 %v3408_v0  ;;  %v3444_v16 = vor.u32 %v3779_v13, %v3441_v15  ;;  %v3786_v13 = vld [vmem:[#allocation11 + $0x8] sm:$0xff] }
 0x129   :  { %v3798_v15 = vld [vmem:[#allocation11 + $0x68] sm:$0xff] }
 0x12a   :  { %v1545_v24 = vpop.f32.mrf.mxu2  ;;  %v1582_v32 = vpop.f32.mrf.mxu0  ;;  %2323 = vmatpush.bf16.msra.mxu3 %v3790_v7 }
 0x12b   :  { %2162 = vmatpush.bf16.msrb.mxu2 %v3356_v21  ;;  %v3775_v21 = vld [vmem:[#allocation9 + $0x1b4] sm:$0xf]  ;;  %v324_v24 = vperm.slane %v4093_v33, 3 }
 0x12c   :  { %2125 = vmatpush.bf16.msra.mxu0 %v3400_v40  ;;  %v3428_v23 = vor.u32 %v3775_v21, %v3425_v22  ;;  %v3794_v22 = vld [vmem:[#allocation11 + $0x48] sm:$0xff] }
 0x12f   :  { %2163 = vmatpush.bf16.msrb.mxu2 %v3348_v14 }
 0x130   :  { %2170 = vmatpush.bf16.msrb.mxu0 %v3460_v9  ;;  %v3789_v9 = vld [vmem:[#allocation11 + $0x20] sm:$0xff] }
 0x131   :  { %2324 = vmatpush.bf16.msra.mxu3 %v3789_v9 }
 0x132   :  { %v1584_v46 = vpop.f32.mrf.mxu0 }
 0x133   :  { %2164 = vmatpush.bf16.msrb.mxu2 %v3340_v42  ;;  %v3401_v42 = vld [vmem:[#allocation9 + $0x188] sm:$0xf0] }
 0x134   :  { %2171 = vmatpush.bf16.msrb.mxu0 %v3452_v55  ;;  %v3404_v43 = vor.u32 %v3769_v41, %v3401_v42 }
 0x137   :  { %v1556_v47 = vpop.f32.mrf.mxu1 }
 0x138   :  { %v1557_v54 = vadd.f32 %v1556_v47, %v1544_v50  ;;  %2172 = vmatpush.bf16.msrb.mxu0 %v3444_v16  ;;  %v3785_v16 = vld [vmem:[#allocation11] sm:$0xff] }
 0x13c   :  { %2173 = vmatpush.bf16.msrb.mxu0 %v3436_v19  ;;  %v3796_v19 = vld [vmem:[#allocation11 + $0x58] sm:$0xff] }
 0x13e   :  { %v1608_v60 = vpop.f32.mrf.mxu0 }
 0x13f   :  { %v1569_v56 = vpop.f32.mrf.mxu3  ;;  %v1558_v30 = vpop.f32.mrf.mxu1 }
 0x140   :  { %v1570_v58 = vadd.f32 %v1569_v56, %v1557_v54  ;;  %2174 = vmatpush.bf16.msrb.mxu0 %v3428_v23  ;;  %v3793_v23 = vld [vmem:[#allocation11 + $0x40] sm:$0xff] }
 0x142   :  { %v1595_v59 = vpop.f32.mrf.mxu2  ;;  %v1583_v63 = vadd.f32 %v1582_v32, %v1570_v58  ;;  %v1753_v58 = vld [vmem:[%s4136_s4] sm:$0x3] }
 0x143   :  { %v1596_v31 = vadd.f32 %v1595_v59, %v324_v24  ;;  %v1755_v30 = vperm.slane %v1753_v58, 0 }
 0x144   :  { %v1679_v38 = vmul.f32 0.2, %v1583_v63  ;;  %2175 = vmatpush.bf16.msrb.mxu0 %v3420_v28 }
 0x145   :  { %v1609_v39 = vadd.f32 %v1608_v60, %v1596_v31 }
 0x146   :  { %v1683_v3 = vmax.f32 %v1583_v63, %v1679_v38  ;;  %v1610_v12 = vpop.f32.mrf.mxu0  ;;  %v1756_v38 = vperm.slane %v1753_v58, 1 }
 0x147   :  { %v1571_v8 = vpop.f32.mrf.mxu3  ;;  %v3787_v12 = vld [vmem:[#allocation11 + $0x10] sm:$0xff] }
 0x148   :  { %v1687_v10 = vpack.c.bf16 %v1683_v3, %v1683_v3  ;;  %2176 = vmatpush.bf16.msrb.mxu0 %v3412_v37  ;;  %v3800_v8 = vld [vmem:[#allocation11 + $0x78] sm:$0xff] }
 0x149   :  { %2334 = vmatpush.bf16.msra.mxu1 %v3800_v8 }
 0x14a   :  { %v1597_v11 = vpop.f32.mrf.mxu2  ;;  %2113 = vmatmul.bf16.vlgmr.msra.gmra.mxu2 %v1687_v10 }
 0x14c   :  { %2177 = vmatpush.bf16.msrb.mxu0 %v3404_v43  ;;  %v3814_v43 = vld [vmem:[%s4138_s6] ss:$0 sm:$0xff]  ;;  %s3983_s6 = smov [#allocation12]  }
 0x14d   :  { %2335 = vmatpush.bf16.msra.mxu1 %v3799_v35 }
 0x151   :  { %2336 = vmatpush.bf16.msra.mxu1 %v3798_v15 }
 0x155   :  { %2337 = vmatpush.bf16.msra.mxu1 %v3797_v17 }
 0x157   :  { %v1621_v20 = vpop.f32.mrf.mxu1 }
 0x158   :  { %v1622_v33 = vadd.f32 %v1621_v20, %v1609_v39  ;;  %v3795_v20 = vld [vmem:[#allocation11 + $0x50] sm:$0xff] }
 0x159   :  { %2338 = vmatpush.bf16.msra.mxu1 %v3796_v19 }
 0x15a   :  { %2165 = vmatmul.bf16.vlgmr.msrb.gmra.mxu2 %v1687_v10  ;;  %v3788_v10 = vld [vmem:[#allocation11 + $0x18] sm:$0xff] }
 0x15b   :  { %2325 = vmatpush.bf16.msra.mxu3 %v3788_v10 }
 0x15d   :  { %2339 = vmatpush.bf16.msra.mxu1 %v3795_v20 }
 0x15e   :  { %v1660_v14 = vpop.f32.mrf.mxu0 }
 0x15f   :  { %v1634_v29 = vpop.f32.mrf.mxu3  ;;  %v1623_v45 = vpop.f32.mrf.mxu1  ;;  %2326 = vmatpush.bf16.msra.mxu3 %v3787_v12 }
 0x160   :  { %v1635_v44 = vadd.f32 %v1634_v29, %v1622_v33 }
 0x161   :  { %2340 = vmatpush.bf16.msra.mxu1 %v3794_v22 }
 0x162   :  { %v1647_v32 = vpop.f32.mrf.mxu2 }
 0x163   :  { %v1648_v47 = vadd.f32 %v1647_v32, %v1635_v44  ;;  %2327 = vmatpush.bf16.msra.mxu3 %v3786_v13 }
 0x165   :  { %v1661_v48 = vadd.f32 %v1660_v14, %v1648_v47  ;;  %2341 = vmatpush.bf16.msra.mxu1 %v3793_v23  ;;  %v3815_v47 = vld [vmem:[%s4139_s7] ss:$0 sm:$0xff]  ;;  %s2403_s7 = sshll.u32 %s3983_s6, 4  ;;  %s2404_s7 = int_to_ptr.vmem [resolvable:$true] %s2403_s7 }
 0x166   :  { %v1662_v51 = vpop.f32.mrf.mxu0 }
 0x167   :  { %v1636_v27 = vpop.f32.mrf.mxu3  ;;  %2328 = vmatpush.bf16.msra.mxu3 %v3785_v16 }
 0x16a   :  { %v1649_v46 = vpop.f32.mrf.mxu2 }
 0x172   :  { %v1673_v49 = vpop.f32.mrf.mxu2 }
 0x173   :  { %v1674_v57 = vadd.f32 %v1673_v49, %v1661_v48 }
 0x175   :  { %v1680_v50 = vmul.f32 0.2, %v1674_v57 }
 0x177   :  { %v1684_v52 = vmax.f32 %v1674_v57, %v1680_v50 }
 0x179   :  { %v1688_v53 = vpack.c.bf16 %v1684_v52, %v1684_v52  ;;  %v2389_v52 = vstv %s4140_s8 }
 0x17a   :  { %v1675_v54 = vpop.f32.mrf.mxu2 }
 0x17b   :  { %2126 = vmatmul.bf16.vlgmr.msra.gmra.mxu0 %v1688_v53 }
 0x17f   :  { %v2088_v4 = vpop.f32.mrf.mxu3 }
 0x180   :  { %v2089_v59 = vadd.f32 %v2088_v4, %v1755_v30 }
 0x187   :  { %v2090_v56 = vpop.f32.mrf.mxu3 }
 0x18b   :  { %2178 = vmatmul.bf16.vlgmr.msrb.gmra.mxu0 %v1688_v53 }
 0x18d   :  { %v2101_v60 = vpop.f32.mrf.mxu1 }
 0x18e   :  { %v2102_v61 = vadd.f32 %v2101_v60, %v2089_v59 }
 0x195   :  { %v2103_v63 = vpop.f32.mrf.mxu1 }
 0x19d   :  { %v2153_v2 = vpop.f32.mrf.mxu1 }
 0x19f   :  { %v2140_v62 = vpop.f32.mrf.mxu3 }
 0x1a0   :  { %v2141_v1 = vadd.f32 %v2140_v62, %v1756_v38 }
 0x1a2   :  { %v2154_v3 = vadd.f32 %v2153_v2, %v2141_v1 }
 0x1a5   :  { %v2155_v40 = vpop.f32.mrf.mxu1 }
 0x1a7   :  { %v2142_v0 = vpop.f32.mrf.mxu3 }
 0x1cd   :  { %v2114_v11 = vpop.f32.mrf.mxu2 }
 0x1ce   :  { %v2115_v24 = vadd.f32 %v2114_v11, %v2102_v61 }
 0x1d5   :  { %v2116_v55 = vpop.f32.mrf.mxu2 }
 0x1dd   :  { %v2166_v18 = vpop.f32.mrf.mxu2 }
 0x1de   :  { %v2167_v32 = vadd.f32 %v2166_v18, %v2154_v3 }
 0x1e5   :  { %v2168_v21 = vpop.f32.mrf.mxu2 }
 0x1f8   :  { %v2127_v25 = vpop.f32.mrf.mxu0 }
 0x1f9   :  { %v2128_v26 = vadd.f32 %v2127_v25, %v2115_v24 }
 0x1fb   :  { %v2183_v28 = vmul.f32 0.2, %v2128_v26 }
 0x1fd   :  { %v2185_v29 = vmax.f32 %v2128_v26, %v2183_v28 }
 0x1ff   :  { %v2187_v31 = vpack.c.bf16 %v2185_v29, %v2185_v29 }
 0x200   :  { %v2129_v45 = vpop.f32.mrf.mxu0 }
 0x201   :  { %2329 = vmatmul.bf16.vlgmr.msra.gmra.mxu3 %v2187_v31 }
 0x208   :  { %v2179_v14 = vpop.f32.mrf.mxu0 }
 0x209   :  { %v2180_v34 = vadd.f32 %v2179_v14, %v2167_v32 }
 0x20b   :  { %v2184_v36 = vmul.f32 0.2, %v2180_v34 }
 0x20d   :  { %v2186_v37 = vmax.f32 %v2180_v34, %v2184_v36 }
 0x20f   :  { %v2188_v39 = vpack.c.bf16 %v2186_v37, %v2186_v37 }
 0x210   :  { %v2181_v41 = vpop.f32.mrf.mxu0 }
 0x211   :  { %2342 = vmatmul.bf16.vlgmr.msra.gmra.mxu1 %v2188_v39 }
 0x284   :  { %v2330_v42 = vpop.f32.mrf.mxu3 }
 0x285   :  { %v2331_v27 = vadd.f32 %v3814_v43, %v2330_v42 }
 0x28c   :  { %v2332_v33 = vpop.f32.mrf.mxu3 }
 0x28e   :  { %v2343_v44 = vpop.f32.mrf.mxu1 }
 0x28f   :  { %v2344_v46 = vadd.f32 %v2343_v44, %v2331_v27 }
 0x291   :  { %v2347_v51 = vmul.f32 0.2, %v2344_v46 }
 0x293   :  { %v2348_v48 = vmax.f32 %v2344_v46, %v2347_v51 }
 0x295   :  { %v2353_v49 = vmul.f32 %v3815_v47, %v2348_v48 }
 0x296   :  { %v2345_v57 = vpop.f32.mrf.mxu1 }
 0x297   :  { %2354 = vadd.xlane.f32.xlu0 %v2353_v49 }
 0x30a   :  { %v2355_v50 = vpop.xlane.xlu0 %2354 }
 0x30b   :  { %2356 = vxpose.xlu0.b32.start.end [1/1] (short) (narrow) %v2355_v50, 8 }
 0x3af   :  { %v2372_v53 = vpop.trf.xlu0 }
 0x3b0   :  { %v2390_v54 = vadd.f32 %v2389_v52, %v2372_v53 }
 0x3b2   :  { %v2391_v4 = vsub.f32 0.0, %v2390_v54 }
 0x3b4   :  { %v2392_v56 = vmul.f32 1.442695, %v2391_v4 }
 0x3b6   :  { %3816 = vpow2.f32 %v2392_v56 }
 0x3bc   :  { %v3817_v58 = vpop.eup %3816 }
 0x3bd   :  { %v2394_v30 = vadd.f32 1.0, %v3817_v58 }
 0x3bf   :  { %3818 = vrcp.f32 %v2394_v30 }
 0x3c5   :  { %v3819_v59 = vpop.eup %3818 }
 0x3c6   :  { %2397 = vst.msk [vmem:[#allocation12] sm:$0x1] %vm2396_vm1, %v3819_v59 }
 0x3c7   :  { %2408 = dma.vmem_to_hbm [thread:$0]  %s2404_s7, 16, %s2406_s1, [#allocation5]  }
 0x3c8   :  { %3970 = dma.done.wait [#allocation5], 16  }
 0x3c9   :  { %3971 = vsyncadd [#allocation5], 4294967280 }
 0x3ca   :  { %2413 = vsyncpa [#allocation4], 1 }
 0x3cb   :  { %2414 = vsyncpa [#allocation7], 1 }
 0x3cc   :  { %2415 = vsyncpa [#allocation10], 1 }
 0x3cd   :  { %2416 = vsyncpa [#allocation5], 1 }

</bundles_post_ra>
